<compile_context>
chip_gen: v7x
topology: tpu7x:2x2x1
jax: 0.10.0
libtpu: 0.0.40
codegen_flags: <defaults>
</compile_context>

<pallas_src>
import functools

import jax
import jax.numpy as jnp
from jax.experimental import pallas as pl
from jax.experimental.pallas import tpu as pltpu


# --------------------------------------------------------------------------
# Fused kernel: one T-chunk of both LSTM layers per grid step.
# --------------------------------------------------------------------------
def _mann_chunk_kernel(x_ref, w_ih1_ref, w_hh1_ref, b1_ref, w2_ref, b2_ref,
                       out_ref, h1_ref, c1_ref, h2_ref, c2_ref,
                       *, Tt, B, H1, H2P):
    f32 = jnp.float32

    # ---- carried state: zero-init on the first chunk only ----
    @pl.when(pl.program_id(0) == 0)
    def _init():
        h1_ref[...] = jnp.zeros_like(h1_ref)
        c1_ref[...] = jnp.zeros_like(c1_ref)
        h2_ref[...] = jnp.zeros_like(h2_ref)
        c2_ref[...] = jnp.zeros_like(c2_ref)

    # ---- stage 1: hoisted layer-1 input projection for this chunk ----
    # (bf16 x / w_ih1 supported; accumulation is always f32.)
    gx1 = jnp.dot(x_ref[...], w_ih1_ref[...],
                  preferred_element_type=f32) + b1_ref[...]     # [Tt*B, 4*H1]

    w_hh1 = w_hh1_ref[...]                                       # [H1, 4*H1]
    w2 = w2_ref[...]                                             # [H1+H2P, 4*H2P]
    b2 = b2_ref[...]                                             # [1, 4*H2P]

    h1 = h1_ref[...].astype(f32)
    c1 = c1_ref[...].astype(f32)
    h2 = h2_ref[...].astype(f32)
    c2 = c2_ref[...].astype(f32)

    def gates_split(g, H):
        # kernel gate order is [i, f, o, g]: one contiguous sigmoid, one tanh
        sig = jax.nn.sigmoid(g[:, :3 * H])
        i = sig[:, 0 * H:1 * H]
        f = sig[:, 1 * H:2 * H]
        o = sig[:, 2 * H:3 * H]
        gg = jnp.tanh(g[:, 3 * H:4 * H])
        return i, f, o, gg

    # ---- stage 2: recurrence over this chunk (Tt small, static unroll) ----
    for t in range(Tt):
        # layer 1: one recurrent MXU dot per step
        g1 = gx1[t * B:(t + 1) * B, :] + jnp.dot(
            h1, w_hh1, preferred_element_type=f32)
        i1, f1, o1, gg1 = gates_split(g1, H1)
        c1 = f1 * c1 + i1 * gg1
        h1 = o1 * jnp.tanh(c1)

        # layer 2: input + recurrent matmuls fused into one MXU dot
        h12 = jnp.concatenate([h1, h2], axis=-1)                 # [B, H1+H2P]
        g2 = jnp.dot(h12, w2, preferred_element_type=f32) + b2
        i2, f2, o2, gg2 = gates_split(g2, H2P)
        c2 = f2 * c2 + i2 * gg2
        h2 = o2 * jnp.tanh(c2)

        # each timestep owns its own tile of the 3-D output block
        out_ref[t, :, :] = h2.astype(out_ref.dtype)

    # ---- write carried state back for the next chunk ----
    h1_ref[...] = h1
    c1_ref[...] = c1
    h2_ref[...] = h2
    c2_ref[...] = c2


# --------------------------------------------------------------------------
# Parameter init (mirrors initialize_weights in the PyTorch code)
# --------------------------------------------------------------------------
def _xavier_uniform(key, shape):
    fan_out, fan_in = shape  # PyTorch weight layout [out, in]
    bound = jnp.sqrt(6.0 / (fan_in + fan_out))
    return jax.random.uniform(key, shape, jnp.float32, -bound, bound)


def _orthogonal(key, shape):
    rows, cols = shape
    n = max(rows, cols)
    a = jax.random.normal(key, (n, n), jnp.float32)
    q, r = jnp.linalg.qr(a)
    s = jnp.sign(jnp.diag(r))
    s = jnp.where(s == 0, 1.0, s)          # guard against zero diagonal
    q = q * s[None, :]
    return q[:rows, :cols]


def _reorder_gates(w, H):
    """torch gate order [i, f, g, o] -> kernel order [i, f, o, g] (last axis)."""
    i = w[..., 0 * H:1 * H]
    f = w[..., 1 * H:2 * H]
    g = w[..., 2 * H:3 * H]
    o = w[..., 3 * H:4 * H]
    return jnp.concatenate([i, f, o, g], axis=-1)


def init_lstm_params(key, input_dim, hidden_dim):
    """Xavier-uniform W_ih, orthogonal W_hh, zero biases (b = b_ih + b_hh).
    Stored transposed ([D_in, 4H] / [H, 4H]) in kernel gate order [i,f,o,g]."""
    k_ih, k_hh = jax.random.split(key)
    w_ih = _xavier_uniform(k_ih, (4 * hidden_dim, input_dim))   # weight_ih_l0
    w_hh = _orthogonal(k_hh, (4 * hidden_dim, hidden_dim))      # weight_hh_l0
    b = jnp.zeros((4 * hidden_dim,), jnp.float32)
    return {
        "w_ih": _reorder_gates(w_ih.T, hidden_dim),
        "w_hh": _reorder_gates(w_hh.T, hidden_dim),
        "b": _reorder_gates(b, hidden_dim),
    }


def _pad_lstm_params(p, H, HP):
    """Zero-pad an LSTM hidden dim H -> HP. Exact: padded units stay 0 forever
    (zero w_ih/w_hh columns, zero bias, zero w_hh rows, zero initial state)."""
    w_ih, w_hh, b = p["w_ih"], p["w_hh"], p["b"]
    D = w_ih.shape[0]
    w_ih_p = jnp.zeros((D, 4, HP), jnp.float32).at[:, :, :H].set(
        w_ih.reshape(D, 4, H)).reshape(D, 4 * HP)
    w_hh_p = jnp.zeros((HP, 4, HP), jnp.float32).at[:H, :, :H].set(
        w_hh.reshape(H, 4, H)).reshape(HP, 4 * HP)
    b_p = jnp.zeros((4, HP), jnp.float32).at[:, :H].set(
        b.reshape(4, H)).reshape(4 * HP)
    return w_ih_p, w_hh_p, b_p


# --------------------------------------------------------------------------
# MANN forward (matches the PyTorch module's forward semantics)
# --------------------------------------------------------------------------
def mann_forward(params, input_images, input_labels, num_classes, *,
                 chunk=8, projection_dtype=jnp.float32):
    B, Kp1, N, _ = input_images.shape
    T = Kp1 * N

    # Build `combined` directly time-major: XLA fuses the transposes into the
    # concat, so there is no separate HBM read+write of the wide tensor.
    zeros_for_query = jnp.zeros_like(input_labels[:, -1:, :, :])
    labels_with_zeros = jnp.concatenate(
        [input_labels[:, :-1, :, :], zeros_for_query], axis=1)
    labels_tm = jnp.swapaxes(
        labels_with_zeros.reshape(B, T, num_classes), 0, 1)      # [T, B, N]
    images_tm = jnp.swapaxes(
        input_images.reshape(B, T, -1), 0, 1)                    # [T, B, 784]
    combined_tm = jnp.concatenate([images_tm, labels_tm], axis=-1)  # [T, B, D]
    D = combined_tm.shape[-1]

    # T-chunking (pad T at the end; padded steps only pollute dropped rows).
    Tt = min(chunk, T)
    NT = pl.cdiv(T, Tt)
    T_pad = NT * Tt
    if T_pad != T:
        combined_tm = jnp.pad(
            combined_tm, ((0, T_pad - T), (0, 0), (0, 0)))
    x_tm = combined_tm.reshape(T_pad * B, D).astype(projection_dtype)

    p1 = params["layer1"]
    H1 = p1["w_hh"].shape[0]
    w_ih1 = p1["w_ih"].astype(projection_dtype)      # [D, 4*H1]
    w_hh1 = p1["w_hh"]                                # [H1, 4*H1]
    b1 = p1["b"].reshape(1, 4 * H1)

    H2 = params["layer2"]["w_hh"].shape[0]            # == num_classes
    H2P = ((H2 + 31) // 32) * 32                       # 4*H2P multiple of 128
    w_ih2, w_hh2, b2 = _pad_lstm_params(params["layer2"], H2, H2P)
    # Stack layer-2 input + recurrent weights so g2 is a single fused dot.
    w2 = jnp.concatenate([w_ih2, w_hh2], axis=0)       # [H1 + H2P, 4*H2P]
    b2 = b2.reshape(1, 4 * H2P)

    kernel = functools.partial(_mann_chunk_kernel, Tt=Tt, B=B, H1=H1, H2P=H2P)

    out3d = pl.pallas_call(
        kernel,
        out_shape=jax.ShapeDtypeStruct((T_pad, B, H2P), jnp.float32),
        grid=(NT,),
        in_specs=[
            pl.BlockSpec((Tt * B, D), lambda i: (i, 0)),          # x chunk
            pl.BlockSpec(w_ih1.shape, lambda i: (0, 0)),          # weights stay
            pl.BlockSpec(w_hh1.shape, lambda i: (0, 0)),          # resident in
            pl.BlockSpec(b1.shape, lambda i: (0, 0)),             # VMEM (block
            pl.BlockSpec(w2.shape, lambda i: (0, 0)),             # index fixed)
            pl.BlockSpec(b2.shape, lambda i: (0, 0)),
        ],
        out_specs=pl.BlockSpec((Tt, B, H2P), lambda i: (i, 0, 0)),
        scratch_shapes=[
            pltpu.VMEM((B, H1), jnp.float32),    # h1
            pltpu.VMEM((B, H1), jnp.float32),    # c1
            pltpu.VMEM((B, H2P), jnp.float32),   # h2
            pltpu.VMEM((B, H2P), jnp.float32),   # c2
        ],
        compiler_params=pltpu.CompilerParams(
            dimension_semantics=("arbitrary",),
            vmem_limit_bytes=32 * 1024 * 1024,
        ),
    )(x_tm, w_ih1, w_hh1, b1, w2, b2)

    out = out3d[:T, :, :num_classes]                  # drop time/hidden pad
    out = jnp.swapaxes(out, 0, 1)                     # [B, T, N]
    return out.reshape(B, Kp1, N, num_classes)


# --------------------------------------------------------------------------
# Pure-JAX reference (lax.scan, unpadded) used to validate the fused kernel.
# --------------------------------------------------------------------------
def _lstm_ref(x_btd, w_ih, w_hh, b):
    B, _, _ = x_btd.shape
    H = w_hh.shape[0]

    def step(carry, xt):
        h, c = carry
        gates = xt @ w_ih + h @ w_hh + b
        i = jax.nn.sigmoid(gates[:, 0 * H:1 * H])
        f = jax.nn.sigmoid(gates[:, 1 * H:2 * H])
        o = jax.nn.sigmoid(gates[:, 2 * H:3 * H])
        g = jnp.tanh(gates[:, 3 * H:4 * H])
        c = f * c + i * g
        h = o * jnp.tanh(c)
        return (h, c), h

    init = (jnp.zeros((B, H), jnp.float32), jnp.zeros((B, H), jnp.float32))
    _, hs = jax.lax.scan(step, init, jnp.swapaxes(x_btd, 0, 1))
    return jnp.swapaxes(hs, 0, 1)


def mann_forward_ref(params, input_images, input_labels, num_classes):
    B, Kp1, N, _ = input_images.shape
    zeros_for_query = jnp.zeros_like(input_labels[:, -1:, :, :])
    labels_with_zeros = jnp.concatenate(
        [input_labels[:, :-1, :, :], zeros_for_query], axis=1)
    labels_flat = labels_with_zeros.reshape(B, Kp1 * N, num_classes)
    combined = jnp.concatenate(
        [input_images.reshape(B, Kp1 * N, -1), labels_flat], axis=-1)
    h1 = _lstm_ref(combined, **params["layer1"])
    h2 = _lstm_ref(h1, **params["layer2"])
    return h2.reshape(B, Kp1, N, N)


if __name__ == "__main__":
    # Small shapes consistent with the module's forward.
    num_classes = 4        # N
    samples_per_class = 2  # K  -> K+1 = 3 "shots" per class episode
    hidden_dim = 32
    B = 2
    Kp1 = samples_per_class + 1
    img_dim = 784

    key = jax.random.PRNGKey(0)
    k_img, k_lbl, k_p1, k_p2 = jax.random.split(key, 4)

    input_images = jax.random.normal(
        k_img, (B, Kp1, num_classes, img_dim), jnp.float32)
    lbl_idx = jax.random.randint(k_lbl, (B, Kp1, num_classes), 0, num_classes)
    input_labels = jax.nn.one_hot(lbl_idx, num_classes, dtype=jnp.float32)

    params = {
        "layer1": init_lstm_params(k_p1, num_classes + img_dim, hidden_dim),
        "layer2": init_lstm_params(k_p2, hidden_dim, num_classes),
    }

    ref = mann_forward_ref(params, input_images, input_labels, num_classes)

    # f32 path: tight comparison against the lax.scan reference.
    fwd = jax.jit(functools.partial(mann_forward, num_classes=num_classes))
    out = jax.block_until_ready(fwd(params, input_images, input_labels))
    assert out.shape == (B, Kp1, num_classes, num_classes)
    assert jnp.allclose(out, ref, atol=1e-5, rtol=1e-5), "Pallas MANN mismatch"

    # bf16-projection path: x / W_ih1 in bf16 (f32 accumulation & gate math).
    fwd_bf16 = jax.jit(functools.partial(
        mann_forward, num_classes=num_classes, projection_dtype=jnp.bfloat16))
    out_bf16 = jax.block_until_ready(
        fwd_bf16(params, input_images, input_labels))
    assert jnp.allclose(out_bf16, ref, atol=5e-2, rtol=0), "bf16 path mismatch"

    print("KERNEL_OK")
</pallas_src>

<mosaic_0001>
module attributes {stable_mosaic.version = 11 : i64} {
  func.func @_mann_chunk_kernel(%arg0: i32, %arg1: memref<16x788xf32, #tpu.memory_space<vmem>>, %arg2: memref<788x128xf32, #tpu.memory_space<vmem>>, %arg3: memref<32x128xf32, #tpu.memory_space<vmem>>, %arg4: memref<1x128xf32, #tpu.memory_space<vmem>>, %arg5: memref<64x128xf32, #tpu.memory_space<vmem>>, %arg6: memref<1x128xf32, #tpu.memory_space<vmem>>, %arg7: memref<8x2x32xf32, #tpu.memory_space<vmem>>, %arg8: memref<2x32xf32, #tpu.memory_space<vmem>>, %arg9: memref<2x32xf32, #tpu.memory_space<vmem>>, %arg10: memref<2x32xf32, #tpu.memory_space<vmem>>, %arg11: memref<2x32xf32, #tpu.memory_space<vmem>>) attributes {dimension_semantics = [#tpu.dimension_semantics<arbitrary>], iteration_bounds = array<i64: 2>, scalar_prefetch = 0 : i64, scratch_operands = 4 : i64, tpu.core_type = #tpu.core_type<tc>, window_params = [{transform_indices = @transform_0, window_bounds = array<i64: 16, 788>}, {pipeline_mode = #tpu.pipeline_mode<synchronous>, transform_indices = @transform_1, window_bounds = array<i64: 788, 128>}, {pipeline_mode = #tpu.pipeline_mode<synchronous>, transform_indices = @transform_2, window_bounds = array<i64: 32, 128>}, {pipeline_mode = #tpu.pipeline_mode<synchronous>, transform_indices = @transform_3, window_bounds = array<i64: 1, 128>}, {pipeline_mode = #tpu.pipeline_mode<synchronous>, transform_indices = @transform_4, window_bounds = array<i64: 64, 128>}, {pipeline_mode = #tpu.pipeline_mode<synchronous>, transform_indices = @transform_5, window_bounds = array<i64: 1, 128>}, {transform_indices = @transform_6, window_bounds = array<i64: 8, 2, 32>}]} {
    %c0_i32 = arith.constant 0 : i32
    %0 = arith.cmpi eq, %arg0, %c0_i32 : i32
    %1 = arith.extui %0 : i1 to i32
    %c0_i32_0 = arith.constant 0 : i32
    %2 = arith.cmpi ne, %1, %c0_i32_0 : i32
    scf.if %2 {
      %cst_77 = arith.constant 0.000000e+00 : f32
      %356 = vector.broadcast %cst_77 : f32 to vector<2x32xf32>
      %c0_78 = arith.constant 0 : index
      %c0_79 = arith.constant 0 : index
      %357 = vector.load %arg8[%c0_78, %c0_79] : memref<2x32xf32, #tpu.memory_space<vmem>>, vector<2x32xf32>
      tpu.vector_store %arg8[%c0_78, %c0_79], %356 {strides = array<i32>} : memref<2x32xf32, #tpu.memory_space<vmem>>, vector<2x32xf32>,
      %cst_80 = arith.constant 0.000000e+00 : f32
      %358 = vector.broadcast %cst_80 : f32 to vector<2x32xf32>
      %c0_81 = arith.constant 0 : index
      %c0_82 = arith.constant 0 : index
      %359 = vector.load %arg9[%c0_81, %c0_82] : memref<2x32xf32, #tpu.memory_space<vmem>>, vector<2x32xf32>
      tpu.vector_store %arg9[%c0_81, %c0_82], %358 {strides = array<i32>} : memref<2x32xf32, #tpu.memory_space<vmem>>, vector<2x32xf32>,
      %cst_83 = arith.constant 0.000000e+00 : f32
      %360 = vector.broadcast %cst_83 : f32 to vector<2x32xf32>
      %c0_84 = arith.constant 0 : index
      %c0_85 = arith.constant 0 : index
      %361 = vector.load %arg10[%c0_84, %c0_85] : memref<2x32xf32, #tpu.memory_space<vmem>>, vector<2x32xf32>
      tpu.vector_store %arg10[%c0_84, %c0_85], %360 {strides = array<i32>} : memref<2x32xf32, #tpu.memory_space<vmem>>, vector<2x32xf32>,
      %cst_86 = arith.constant 0.000000e+00 : f32
      %362 = vector.broadcast %cst_86 : f32 to vector<2x32xf32>
      %c0_87 = arith.constant 0 : index
      %c0_88 = arith.constant 0 : index
      %363 = vector.load %arg11[%c0_87, %c0_88] : memref<2x32xf32, #tpu.memory_space<vmem>>, vector<2x32xf32>
      tpu.vector_store %arg11[%c0_87, %c0_88], %362 {strides = array<i32>} : memref<2x32xf32, #tpu.memory_space<vmem>>, vector<2x32xf32>,
    } else {
    }
    %c0 = arith.constant 0 : index
    %c0_1 = arith.constant 0 : index
    %3 = vector.load %arg1[%c0, %c0_1] : memref<16x788xf32, #tpu.memory_space<vmem>>, vector<16x788xf32>
    %c0_2 = arith.constant 0 : index
    %c0_3 = arith.constant 0 : index
    %4 = vector.load %arg2[%c0_2, %c0_3] : memref<788x128xf32, #tpu.memory_space<vmem>>, vector<788x128xf32>
    %cst = arith.constant dense<0.000000e+00> : vector<16x128xf32>
    %5 = tpu.matmul %3, %4, %cst {dimension_numbers = #tpu.dot_dimension_numbers<[1], [0], [0], [1], [0, 0, 1, 1], [], []>} : vector<16x788xf32>, vector<788x128xf32>, vector<16x128xf32> -> vector<16x128xf32>
    %c0_4 = arith.constant 0 : index
    %c0_5 = arith.constant 0 : index
    %6 = vector.load %arg4[%c0_4, %c0_5] : memref<1x128xf32, #tpu.memory_space<vmem>>, vector<1x128xf32>
    %7 = vector.broadcast %6 : vector<1x128xf32> to vector<16x128xf32>
    %8 = arith.addf %5, %7 : vector<16x128xf32>
    %c0_6 = arith.constant 0 : index
    %c0_7 = arith.constant 0 : index
    %9 = vector.load %arg3[%c0_6, %c0_7] : memref<32x128xf32, #tpu.memory_space<vmem>>, vector<32x128xf32>
    %c0_8 = arith.constant 0 : index
    %c0_9 = arith.constant 0 : index
    %10 = vector.load %arg5[%c0_8, %c0_9] : memref<64x128xf32, #tpu.memory_space<vmem>>, vector<64x128xf32>
    %c0_10 = arith.constant 0 : index
    %c0_11 = arith.constant 0 : index
    %11 = vector.load %arg6[%c0_10, %c0_11] : memref<1x128xf32, #tpu.memory_space<vmem>>, vector<1x128xf32>
    %c0_12 = arith.constant 0 : index
    %c0_13 = arith.constant 0 : index
    %12 = vector.load %arg8[%c0_12, %c0_13] : memref<2x32xf32, #tpu.memory_space<vmem>>, vector<2x32xf32>
    %c0_14 = arith.constant 0 : index
    %c0_15 = arith.constant 0 : index
    %13 = vector.load %arg9[%c0_14, %c0_15] : memref<2x32xf32, #tpu.memory_space<vmem>>, vector<2x32xf32>
    %c0_16 = arith.constant 0 : index
    %c0_17 = arith.constant 0 : index
    %14 = vector.load %arg10[%c0_16, %c0_17] : memref<2x32xf32, #tpu.memory_space<vmem>>, vector<2x32xf32>
    %c0_18 = arith.constant 0 : index
    %c0_19 = arith.constant 0 : index
    %15 = vector.load %arg11[%c0_18, %c0_19] : memref<2x32xf32, #tpu.memory_space<vmem>>, vector<2x32xf32>
    %16 = vector.extract_strided_slice %8 {offsets = [0, 0], sizes = [2, 128], strides = [1, 1]} : vector<16x128xf32> to vector<2x128xf32>
    %cst_20 = arith.constant dense<0.000000e+00> : vector<2x128xf32>
    %17 = tpu.matmul %12, %9, %cst_20 {dimension_numbers = #tpu.dot_dimension_numbers<[1], [0], [0], [1], [0, 0, 1, 1], [], []>} : vector<2x32xf32>, vector<32x128xf32>, vector<2x128xf32> -> vector<2x128xf32>
    %18 = arith.addf %16, %17 : vector<2x128xf32>
    %19 = vector.extract_strided_slice %18 {offsets = [0, 0], sizes = [2, 96], strides = [1, 1]} : vector<2x128xf32> to vector<2x96xf32>
    %20 = arith.negf %19 : vector<2x96xf32>
    %21 = math.exp %20 : vector<2x96xf32>
    %cst_21 = arith.constant 1.000000e+00 : f32
    %22 = vector.broadcast %cst_21 : f32 to vector<2x96xf32>
    %23 = arith.addf %22, %21 : vector<2x96xf32>
    %24 = arith.divf %22, %23 : vector<2x96xf32>
    %25 = vector.extract_strided_slice %24 {offsets = [0, 0], sizes = [2, 32], strides = [1, 1]} : vector<2x96xf32> to vector<2x32xf32>
    %26 = vector.extract_strided_slice %24 {offsets = [0, 32], sizes = [2, 32], strides = [1, 1]} : vector<2x96xf32> to vector<2x32xf32>
    %27 = vector.extract_strided_slice %24 {offsets = [0, 64], sizes = [2, 32], strides = [1, 1]} : vector<2x96xf32> to vector<2x32xf32>
    %28 = vector.extract_strided_slice %18 {offsets = [0, 96], sizes = [2, 32], strides = [1, 1]} : vector<2x128xf32> to vector<2x32xf32>
    %29 = math.tanh %28 : vector<2x32xf32>
    %30 = arith.mulf %26, %13 : vector<2x32xf32>
    %31 = arith.mulf %25, %29 : vector<2x32xf32>
    %32 = arith.addf %30, %31 : vector<2x32xf32>
    %33 = math.tanh %32 : vector<2x32xf32>
    %34 = arith.mulf %27, %33 : vector<2x32xf32>
    %35 = tpu.concatenate %34, %14 in 1 : vector<2x32xf32>, vector<2x32xf32> -> vector<2x64xf32>
    %cst_22 = arith.constant dense<0.000000e+00> : vector<2x128xf32>
    %36 = tpu.matmul %35, %10, %cst_22 {dimension_numbers = #tpu.dot_dimension_numbers<[1], [0], [0], [1], [0, 0, 1, 1], [], []>} : vector<2x64xf32>, vector<64x128xf32>, vector<2x128xf32> -> vector<2x128xf32>
    %37 = vector.broadcast %11 : vector<1x128xf32> to vector<2x128xf32>
    %38 = arith.addf %36, %37 : vector<2x128xf32>
    %39 = vector.extract_strided_slice %38 {offsets = [0, 0], sizes = [2, 96], strides = [1, 1]} : vector<2x128xf32> to vector<2x96xf32>
    %40 = arith.negf %39 : vector<2x96xf32>
    %41 = math.exp %40 : vector<2x96xf32>
    %cst_23 = arith.constant 1.000000e+00 : f32
    %42 = vector.broadcast %cst_23 : f32 to vector<2x96xf32>
    %43 = arith.addf %42, %41 : vector<2x96xf32>
    %44 = arith.divf %42, %43 : vector<2x96xf32>
    %45 = vector.extract_strided_slice %44 {offsets = [0, 0], sizes = [2, 32], strides = [1, 1]} : vector<2x96xf32> to vector<2x32xf32>
    %46 = vector.extract_strided_slice %44 {offsets = [0, 32], sizes = [2, 32], strides = [1, 1]} : vector<2x96xf32> to vector<2x32xf32>
    %47 = vector.extract_strided_slice %44 {offsets = [0, 64], sizes = [2, 32], strides = [1, 1]} : vector<2x96xf32> to vector<2x32xf32>
    %48 = vector.extract_strided_slice %38 {offsets = [0, 96], sizes = [2, 32], strides = [1, 1]} : vector<2x128xf32> to vector<2x32xf32>
    %49 = math.tanh %48 : vector<2x32xf32>
    %50 = arith.mulf %46, %15 : vector<2x32xf32>
    %51 = arith.mulf %45, %49 : vector<2x32xf32>
    %52 = arith.addf %50, %51 : vector<2x32xf32>
    %53 = math.tanh %52 : vector<2x32xf32>
    %54 = arith.mulf %47, %53 : vector<2x32xf32>
    %c0_24 = arith.constant 0 : index
    %c0_25 = arith.constant 0 : index
    %c0_26 = arith.constant 0 : index
    %55 = vector.load %arg7[%c0_24, %c0_25, %c0_26] : memref<8x2x32xf32, #tpu.memory_space<vmem>>, vector<1x2x32xf32>
    %56 = vector.shape_cast %55 : vector<1x2x32xf32> to vector<2x32xf32>
    %57 = vector.shape_cast %54 : vector<2x32xf32> to vector<1x2x32xf32>
    tpu.vector_store %arg7[%c0_24, %c0_25, %c0_26], %57 {strides = array<i32>} : memref<8x2x32xf32, #tpu.memory_space<vmem>>, vector<1x2x32xf32>,
    %58 = vector.extract_strided_slice %8 {offsets = [2, 0], sizes = [2, 128], strides = [1, 1]} : vector<16x128xf32> to vector<2x128xf32>
    %cst_27 = arith.constant dense<0.000000e+00> : vector<2x128xf32>
    %59 = tpu.matmul %34, %9, %cst_27 {dimension_numbers = #tpu.dot_dimension_numbers<[1], [0], [0], [1], [0, 0, 1, 1], [], []>} : vector<2x32xf32>, vector<32x128xf32>, vector<2x128xf32> -> vector<2x128xf32>
    %60 = arith.addf %58, %59 : vector<2x128xf32>
    %61 = vector.extract_strided_slice %60 {offsets = [0, 0], sizes = [2, 96], strides = [1, 1]} : vector<2x128xf32> to vector<2x96xf32>
    %62 = arith.negf %61 : vector<2x96xf32>
    %63 = math.exp %62 : vector<2x96xf32>
    %cst_28 = arith.constant 1.000000e+00 : f32
    %64 = vector.broadcast %cst_28 : f32 to vector<2x96xf32>
    %65 = arith.addf %64, %63 : vector<2x96xf32>
    %66 = arith.divf %64, %65 : vector<2x96xf32>
    %67 = vector.extract_strided_slice %66 {offsets = [0, 0], sizes = [2, 32], strides = [1, 1]} : vector<2x96xf32> to vector<2x32xf32>
    %68 = vector.extract_strided_slice %66 {offsets = [0, 32], sizes = [2, 32], strides = [1, 1]} : vector<2x96xf32> to vector<2x32xf32>
    %69 = vector.extract_strided_slice %66 {offsets = [0, 64], sizes = [2, 32], strides = [1, 1]} : vector<2x96xf32> to vector<2x32xf32>
    %70 = vector.extract_strided_slice %60 {offsets = [0, 96], sizes = [2, 32], strides = [1, 1]} : vector<2x128xf32> to vector<2x32xf32>
    %71 = math.tanh %70 : vector<2x32xf32>
    %72 = arith.mulf %68, %32 : vector<2x32xf32>
    %73 = arith.mulf %67, %71 : vector<2x32xf32>
    %74 = arith.addf %72, %73 : vector<2x32xf32>
    %75 = math.tanh %74 : vector<2x32xf32>
    %76 = arith.mulf %69, %75 : vector<2x32xf32>
    %77 = tpu.concatenate %76, %54 in 1 : vector<2x32xf32>, vector<2x32xf32> -> vector<2x64xf32>
    %cst_29 = arith.constant dense<0.000000e+00> : vector<2x128xf32>
    %78 = tpu.matmul %77, %10, %cst_29 {dimension_numbers = #tpu.dot_dimension_numbers<[1], [0], [0], [1], [0, 0, 1, 1], [], []>} : vector<2x64xf32>, vector<64x128xf32>, vector<2x128xf32> -> vector<2x128xf32>
    %79 = vector.broadcast %11 : vector<1x128xf32> to vector<2x128xf32>
    %80 = arith.addf %78, %79 : vector<2x128xf32>
    %81 = vector.extract_strided_slice %80 {offsets = [0, 0], sizes = [2, 96], strides = [1, 1]} : vector<2x128xf32> to vector<2x96xf32>
    %82 = arith.negf %81 : vector<2x96xf32>
    %83 = math.exp %82 : vector<2x96xf32>
    %cst_30 = arith.constant 1.000000e+00 : f32
    %84 = vector.broadcast %cst_30 : f32 to vector<2x96xf32>
    %85 = arith.addf %84, %83 : vector<2x96xf32>
    %86 = arith.divf %84, %85 : vector<2x96xf32>
    %87 = vector.extract_strided_slice %86 {offsets = [0, 0], sizes = [2, 32], strides = [1, 1]} : vector<2x96xf32> to vector<2x32xf32>
    %88 = vector.extract_strided_slice %86 {offsets = [0, 32], sizes = [2, 32], strides = [1, 1]} : vector<2x96xf32> to vector<2x32xf32>
    %89 = vector.extract_strided_slice %86 {offsets = [0, 64], sizes = [2, 32], strides = [1, 1]} : vector<2x96xf32> to vector<2x32xf32>
    %90 = vector.extract_strided_slice %80 {offsets = [0, 96], sizes = [2, 32], strides = [1, 1]} : vector<2x128xf32> to vector<2x32xf32>
    %91 = math.tanh %90 : vector<2x32xf32>
    %92 = arith.mulf %88, %52 : vector<2x32xf32>
    %93 = arith.mulf %87, %91 : vector<2x32xf32>
    %94 = arith.addf %92, %93 : vector<2x32xf32>
    %95 = math.tanh %94 : vector<2x32xf32>
    %96 = arith.mulf %89, %95 : vector<2x32xf32>
    %c1 = arith.constant 1 : index
    %c0_31 = arith.constant 0 : index
    %c0_32 = arith.constant 0 : index
    %97 = vector.load %arg7[%c1, %c0_31, %c0_32] : memref<8x2x32xf32, #tpu.memory_space<vmem>>, vector<1x2x32xf32>
    %98 = vector.shape_cast %97 : vector<1x2x32xf32> to vector<2x32xf32>
    %99 = vector.shape_cast %96 : vector<2x32xf32> to vector<1x2x32xf32>
    tpu.vector_store %arg7[%c1, %c0_31, %c0_32], %99 {strides = array<i32>} : memref<8x2x32xf32, #tpu.memory_space<vmem>>, vector<1x2x32xf32>,
    %100 = vector.extract_strided_slice %8 {offsets = [4, 0], sizes = [2, 128], strides = [1, 1]} : vector<16x128xf32> to vector<2x128xf32>
    %cst_33 = arith.constant dense<0.000000e+00> : vector<2x128xf32>
    %101 = tpu.matmul %76, %9, %cst_33 {dimension_numbers = #tpu.dot_dimension_numbers<[1], [0], [0], [1], [0, 0, 1, 1], [], []>} : vector<2x32xf32>, vector<32x128xf32>, vector<2x128xf32> -> vector<2x128xf32>
    %102 = arith.addf %100, %101 : vector<2x128xf32>
    %103 = vector.extract_strided_slice %102 {offsets = [0, 0], sizes = [2, 96], strides = [1, 1]} : vector<2x128xf32> to vector<2x96xf32>
    %104 = arith.negf %103 : vector<2x96xf32>
    %105 = math.exp %104 : vector<2x96xf32>
    %cst_34 = arith.constant 1.000000e+00 : f32
    %106 = vector.broadcast %cst_34 : f32 to vector<2x96xf32>
    %107 = arith.addf %106, %105 : vector<2x96xf32>
    %108 = arith.divf %106, %107 : vector<2x96xf32>
    %109 = vector.extract_strided_slice %108 {offsets = [0, 0], sizes = [2, 32], strides = [1, 1]} : vector<2x96xf32> to vector<2x32xf32>
    %110 = vector.extract_strided_slice %108 {offsets = [0, 32], sizes = [2, 32], strides = [1, 1]} : vector<2x96xf32> to vector<2x32xf32>
    %111 = vector.extract_strided_slice %108 {offsets = [0, 64], sizes = [2, 32], strides = [1, 1]} : vector<2x96xf32> to vector<2x32xf32>
    %112 = vector.extract_strided_slice %102 {offsets = [0, 96], sizes = [2, 32], strides = [1, 1]} : vector<2x128xf32> to vector<2x32xf32>
    %113 = math.tanh %112 : vector<2x32xf32>
    %114 = arith.mulf %110, %74 : vector<2x32xf32>
    %115 = arith.mulf %109, %113 : vector<2x32xf32>
    %116 = arith.addf %114, %115 : vector<2x32xf32>
    %117 = math.tanh %116 : vector<2x32xf32>
    %118 = arith.mulf %111, %117 : vector<2x32xf32>
    %119 = tpu.concatenate %118, %96 in 1 : vector<2x32xf32>, vector<2x32xf32> -> vector<2x64xf32>
    %cst_35 = arith.constant dense<0.000000e+00> : vector<2x128xf32>
    %120 = tpu.matmul %119, %10, %cst_35 {dimension_numbers = #tpu.dot_dimension_numbers<[1], [0], [0], [1], [0, 0, 1, 1], [], []>} : vector<2x64xf32>, vector<64x128xf32>, vector<2x128xf32> -> vector<2x128xf32>
    %121 = vector.broadcast %11 : vector<1x128xf32> to vector<2x128xf32>
    %122 = arith.addf %120, %121 : vector<2x128xf32>
    %123 = vector.extract_strided_slice %122 {offsets = [0, 0], sizes = [2, 96], strides = [1, 1]} : vector<2x128xf32> to vector<2x96xf32>
    %124 = arith.negf %123 : vector<2x96xf32>
    %125 = math.exp %124 : vector<2x96xf32>
    %cst_36 = arith.constant 1.000000e+00 : f32
    %126 = vector.broadcast %cst_36 : f32 to vector<2x96xf32>
    %127 = arith.addf %126, %125 : vector<2x96xf32>
    %128 = arith.divf %126, %127 : vector<2x96xf32>
    %129 = vector.extract_strided_slice %128 {offsets = [0, 0], sizes = [2, 32], strides = [1, 1]} : vector<2x96xf32> to vector<2x32xf32>
    %130 = vector.extract_strided_slice %128 {offsets = [0, 32], sizes = [2, 32], strides = [1, 1]} : vector<2x96xf32> to vector<2x32xf32>
    %131 = vector.extract_strided_slice %128 {offsets = [0, 64], sizes = [2, 32], strides = [1, 1]} : vector<2x96xf32> to vector<2x32xf32>
    %132 = vector.extract_strided_slice %122 {offsets = [0, 96], sizes = [2, 32], strides = [1, 1]} : vector<2x128xf32> to vector<2x32xf32>
    %133 = math.tanh %132 : vector<2x32xf32>
    %134 = arith.mulf %130, %94 : vector<2x32xf32>
    %135 = arith.mulf %129, %133 : vector<2x32xf32>
    %136 = arith.addf %134, %135 : vector<2x32xf32>
    %137 = math.tanh %136 : vector<2x32xf32>
    %138 = arith.mulf %131, %137 : vector<2x32xf32>
    %c2 = arith.constant 2 : index
    %c0_37 = arith.constant 0 : index
    %c0_38 = arith.constant 0 : index
    %139 = vector.load %arg7[%c2, %c0_37, %c0_38] : memref<8x2x32xf32, #tpu.memory_space<vmem>>, vector<1x2x32xf32>
    %140 = vector.shape_cast %139 : vector<1x2x32xf32> to vector<2x32xf32>
    %141 = vector.shape_cast %138 : vector<2x32xf32> to vector<1x2x32xf32>
    tpu.vector_store %arg7[%c2, %c0_37, %c0_38], %141 {strides = array<i32>} : memref<8x2x32xf32, #tpu.memory_space<vmem>>, vector<1x2x32xf32>,
    %142 = vector.extract_strided_slice %8 {offsets = [6, 0], sizes = [2, 128], strides = [1, 1]} : vector<16x128xf32> to vector<2x128xf32>
    %cst_39 = arith.constant dense<0.000000e+00> : vector<2x128xf32>
    %143 = tpu.matmul %118, %9, %cst_39 {dimension_numbers = #tpu.dot_dimension_numbers<[1], [0], [0], [1], [0, 0, 1, 1], [], []>} : vector<2x32xf32>, vector<32x128xf32>, vector<2x128xf32> -> vector<2x128xf32>
    %144 = arith.addf %142, %143 : vector<2x128xf32>
    %145 = vector.extract_strided_slice %144 {offsets = [0, 0], sizes = [2, 96], strides = [1, 1]} : vector<2x128xf32> to vector<2x96xf32>
    %146 = arith.negf %145 : vector<2x96xf32>
    %147 = math.exp %146 : vector<2x96xf32>
    %cst_40 = arith.constant 1.000000e+00 : f32
    %148 = vector.broadcast %cst_40 : f32 to vector<2x96xf32>
    %149 = arith.addf %148, %147 : vector<2x96xf32>
    %150 = arith.divf %148, %149 : vector<2x96xf32>
    %151 = vector.extract_strided_slice %150 {offsets = [0, 0], sizes = [2, 32], strides = [1, 1]} : vector<2x96xf32> to vector<2x32xf32>
    %152 = vector.extract_strided_slice %150 {offsets = [0, 32], sizes = [2, 32], strides = [1, 1]} : vector<2x96xf32> to vector<2x32xf32>
    %153 = vector.extract_strided_slice %150 {offsets = [0, 64], sizes = [2, 32], strides = [1, 1]} : vector<2x96xf32> to vector<2x32xf32>
    %154 = vector.extract_strided_slice %144 {offsets = [0, 96], sizes = [2, 32], strides = [1, 1]} : vector<2x128xf32> to vector<2x32xf32>
    %155 = math.tanh %154 : vector<2x32xf32>
    %156 = arith.mulf %152, %116 : vector<2x32xf32>
    %157 = arith.mulf %151, %155 : vector<2x32xf32>
    %158 = arith.addf %156, %157 : vector<2x32xf32>
    %159 = math.tanh %158 : vector<2x32xf32>
    %160 = arith.mulf %153, %159 : vector<2x32xf32>
    %161 = tpu.concatenate %160, %138 in 1 : vector<2x32xf32>, vector<2x32xf32> -> vector<2x64xf32>
    %cst_41 = arith.constant dense<0.000000e+00> : vector<2x128xf32>
    %162 = tpu.matmul %161, %10, %cst_41 {dimension_numbers = #tpu.dot_dimension_numbers<[1], [0], [0], [1], [0, 0, 1, 1], [], []>} : vector<2x64xf32>, vector<64x128xf32>, vector<2x128xf32> -> vector<2x128xf32>
    %163 = vector.broadcast %11 : vector<1x128xf32> to vector<2x128xf32>
    %164 = arith.addf %162, %163 : vector<2x128xf32>
    %165 = vector.extract_strided_slice %164 {offsets = [0, 0], sizes = [2, 96], strides = [1, 1]} : vector<2x128xf32> to vector<2x96xf32>
    %166 = arith.negf %165 : vector<2x96xf32>
    %167 = math.exp %166 : vector<2x96xf32>
    %cst_42 = arith.constant 1.000000e+00 : f32
    %168 = vector.broadcast %cst_42 : f32 to vector<2x96xf32>
    %169 = arith.addf %168, %167 : vector<2x96xf32>
    %170 = arith.divf %168, %169 : vector<2x96xf32>
    %171 = vector.extract_strided_slice %170 {offsets = [0, 0], sizes = [2, 32], strides = [1, 1]} : vector<2x96xf32> to vector<2x32xf32>
    %172 = vector.extract_strided_slice %170 {offsets = [0, 32], sizes = [2, 32], strides = [1, 1]} : vector<2x96xf32> to vector<2x32xf32>
    %173 = vector.extract_strided_slice %170 {offsets = [0, 64], sizes = [2, 32], strides = [1, 1]} : vector<2x96xf32> to vector<2x32xf32>
    %174 = vector.extract_strided_slice %164 {offsets = [0, 96], sizes = [2, 32], strides = [1, 1]} : vector<2x128xf32> to vector<2x32xf32>
    %175 = math.tanh %174 : vector<2x32xf32>
    %176 = arith.mulf %172, %136 : vector<2x32xf32>
    %177 = arith.mulf %171, %175 : vector<2x32xf32>
    %178 = arith.addf %176, %177 : vector<2x32xf32>
    %179 = math.tanh %178 : vector<2x32xf32>
    %180 = arith.mulf %173, %179 : vector<2x32xf32>
    %c3 = arith.constant 3 : index
    %c0_43 = arith.constant 0 : index
    %c0_44 = arith.constant 0 : index
    %181 = vector.load %arg7[%c3, %c0_43, %c0_44] : memref<8x2x32xf32, #tpu.memory_space<vmem>>, vector<1x2x32xf32>
    %182 = vector.shape_cast %181 : vector<1x2x32xf32> to vector<2x32xf32>
    %183 = vector.shape_cast %180 : vector<2x32xf32> to vector<1x2x32xf32>
    tpu.vector_store %arg7[%c3, %c0_43, %c0_44], %183 {strides = array<i32>} : memref<8x2x32xf32, #tpu.memory_space<vmem>>, vector<1x2x32xf32>,
    %184 = vector.extract_strided_slice %8 {offsets = [8, 0], sizes = [2, 128], strides = [1, 1]} : vector<16x128xf32> to vector<2x128xf32>
    %cst_45 = arith.constant dense<0.000000e+00> : vector<2x128xf32>
    %185 = tpu.matmul %160, %9, %cst_45 {dimension_numbers = #tpu.dot_dimension_numbers<[1], [0], [0], [1], [0, 0, 1, 1], [], []>} : vector<2x32xf32>, vector<32x128xf32>, vector<2x128xf32> -> vector<2x128xf32>
    %186 = arith.addf %184, %185 : vector<2x128xf32>
    %187 = vector.extract_strided_slice %186 {offsets = [0, 0], sizes = [2, 96], strides = [1, 1]} : vector<2x128xf32> to vector<2x96xf32>
    %188 = arith.negf %187 : vector<2x96xf32>
    %189 = math.exp %188 : vector<2x96xf32>
    %cst_46 = arith.constant 1.000000e+00 : f32
    %190 = vector.broadcast %cst_46 : f32 to vector<2x96xf32>
    %191 = arith.addf %190, %189 : vector<2x96xf32>
    %192 = arith.divf %190, %191 : vector<2x96xf32>
    %193 = vector.extract_strided_slice %192 {offsets = [0, 0], sizes = [2, 32], strides = [1, 1]} : vector<2x96xf32> to vector<2x32xf32>
    %194 = vector.extract_strided_slice %192 {offsets = [0, 32], sizes = [2, 32], strides = [1, 1]} : vector<2x96xf32> to vector<2x32xf32>
    %195 = vector.extract_strided_slice %192 {offsets = [0, 64], sizes = [2, 32], strides = [1, 1]} : vector<2x96xf32> to vector<2x32xf32>
    %196 = vector.extract_strided_slice %186 {offsets = [0, 96], sizes = [2, 32], strides = [1, 1]} : vector<2x128xf32> to vector<2x32xf32>
    %197 = math.tanh %196 : vector<2x32xf32>
    %198 = arith.mulf %194, %158 : vector<2x32xf32>
    %199 = arith.mulf %193, %197 : vector<2x32xf32>
    %200 = arith.addf %198, %199 : vector<2x32xf32>
    %201 = math.tanh %200 : vector<2x32xf32>
    %202 = arith.mulf %195, %201 : vector<2x32xf32>
    %203 = tpu.concatenate %202, %180 in 1 : vector<2x32xf32>, vector<2x32xf32> -> vector<2x64xf32>
    %cst_47 = arith.constant dense<0.000000e+00> : vector<2x128xf32>
    %204 = tpu.matmul %203, %10, %cst_47 {dimension_numbers = #tpu.dot_dimension_numbers<[1], [0], [0], [1], [0, 0, 1, 1], [], []>} : vector<2x64xf32>, vector<64x128xf32>, vector<2x128xf32> -> vector<2x128xf32>
    %205 = vector.broadcast %11 : vector<1x128xf32> to vector<2x128xf32>
    %206 = arith.addf %204, %205 : vector<2x128xf32>
    %207 = vector.extract_strided_slice %206 {offsets = [0, 0], sizes = [2, 96], strides = [1, 1]} : vector<2x128xf32> to vector<2x96xf32>
    %208 = arith.negf %207 : vector<2x96xf32>
    %209 = math.exp %208 : vector<2x96xf32>
    %cst_48 = arith.constant 1.000000e+00 : f32
    %210 = vector.broadcast %cst_48 : f32 to vector<2x96xf32>
    %211 = arith.addf %210, %209 : vector<2x96xf32>
    %212 = arith.divf %210, %211 : vector<2x96xf32>
    %213 = vector.extract_strided_slice %212 {offsets = [0, 0], sizes = [2, 32], strides = [1, 1]} : vector<2x96xf32> to vector<2x32xf32>
    %214 = vector.extract_strided_slice %212 {offsets = [0, 32], sizes = [2, 32], strides = [1, 1]} : vector<2x96xf32> to vector<2x32xf32>
    %215 = vector.extract_strided_slice %212 {offsets = [0, 64], sizes = [2, 32], strides = [1, 1]} : vector<2x96xf32> to vector<2x32xf32>
    %216 = vector.extract_strided_slice %206 {offsets = [0, 96], sizes = [2, 32], strides = [1, 1]} : vector<2x128xf32> to vector<2x32xf32>
    %217 = math.tanh %216 : vector<2x32xf32>
    %218 = arith.mulf %214, %178 : vector<2x32xf32>
    %219 = arith.mulf %213, %217 : vector<2x32xf32>
    %220 = arith.addf %218, %219 : vector<2x32xf32>
    %221 = math.tanh %220 : vector<2x32xf32>
    %222 = arith.mulf %215, %221 : vector<2x32xf32>
    %c4 = arith.constant 4 : index
    %c0_49 = arith.constant 0 : index
    %c0_50 = arith.constant 0 : index
    %223 = vector.load %arg7[%c4, %c0_49, %c0_50] : memref<8x2x32xf32, #tpu.memory_space<vmem>>, vector<1x2x32xf32>
    %224 = vector.shape_cast %223 : vector<1x2x32xf32> to vector<2x32xf32>
    %225 = vector.shape_cast %222 : vector<2x32xf32> to vector<1x2x32xf32>
    tpu.vector_store %arg7[%c4, %c0_49, %c0_50], %225 {strides = array<i32>} : memref<8x2x32xf32, #tpu.memory_space<vmem>>, vector<1x2x32xf32>,
    %226 = vector.extract_strided_slice %8 {offsets = [10, 0], sizes = [2, 128], strides = [1, 1]} : vector<16x128xf32> to vector<2x128xf32>
    %cst_51 = arith.constant dense<0.000000e+00> : vector<2x128xf32>
    %227 = tpu.matmul %202, %9, %cst_51 {dimension_numbers = #tpu.dot_dimension_numbers<[1], [0], [0], [1], [0, 0, 1, 1], [], []>} : vector<2x32xf32>, vector<32x128xf32>, vector<2x128xf32> -> vector<2x128xf32>
    %228 = arith.addf %226, %227 : vector<2x128xf32>
    %229 = vector.extract_strided_slice %228 {offsets = [0, 0], sizes = [2, 96], strides = [1, 1]} : vector<2x128xf32> to vector<2x96xf32>
    %230 = arith.negf %229 : vector<2x96xf32>
    %231 = math.exp %230 : vector<2x96xf32>
    %cst_52 = arith.constant 1.000000e+00 : f32
    %232 = vector.broadcast %cst_52 : f32 to vector<2x96xf32>
    %233 = arith.addf %232, %231 : vector<2x96xf32>
    %234 = arith.divf %232, %233 : vector<2x96xf32>
    %235 = vector.extract_strided_slice %234 {offsets = [0, 0], sizes = [2, 32], strides = [1, 1]} : vector<2x96xf32> to vector<2x32xf32>
    %236 = vector.extract_strided_slice %234 {offsets = [0, 32], sizes = [2, 32], strides = [1, 1]} : vector<2x96xf32> to vector<2x32xf32>
    %237 = vector.extract_strided_slice %234 {offsets = [0, 64], sizes = [2, 32], strides = [1, 1]} : vector<2x96xf32> to vector<2x32xf32>
    %238 = vector.extract_strided_slice %228 {offsets = [0, 96], sizes = [2, 32], strides = [1, 1]} : vector<2x128xf32> to vector<2x32xf32>
    %239 = math.tanh %238 : vector<2x32xf32>
    %240 = arith.mulf %236, %200 : vector<2x32xf32>
    %241 = arith.mulf %235, %239 : vector<2x32xf32>
    %242 = arith.addf %240, %241 : vector<2x32xf32>
    %243 = math.tanh %242 : vector<2x32xf32>
    %244 = arith.mulf %237, %243 : vector<2x32xf32>
    %245 = tpu.concatenate %244, %222 in 1 : vector<2x32xf32>, vector<2x32xf32> -> vector<2x64xf32>
    %cst_53 = arith.constant dense<0.000000e+00> : vector<2x128xf32>
    %246 = tpu.matmul %245, %10, %cst_53 {dimension_numbers = #tpu.dot_dimension_numbers<[1], [0], [0], [1], [0, 0, 1, 1], [], []>} : vector<2x64xf32>, vector<64x128xf32>, vector<2x128xf32> -> vector<2x128xf32>
    %247 = vector.broadcast %11 : vector<1x128xf32> to vector<2x128xf32>
    %248 = arith.addf %246, %247 : vector<2x128xf32>
    %249 = vector.extract_strided_slice %248 {offsets = [0, 0], sizes = [2, 96], strides = [1, 1]} : vector<2x128xf32> to vector<2x96xf32>
    %250 = arith.negf %249 : vector<2x96xf32>
    %251 = math.exp %250 : vector<2x96xf32>
    %cst_54 = arith.constant 1.000000e+00 : f32
    %252 = vector.broadcast %cst_54 : f32 to vector<2x96xf32>
    %253 = arith.addf %252, %251 : vector<2x96xf32>
    %254 = arith.divf %252, %253 : vector<2x96xf32>
    %255 = vector.extract_strided_slice %254 {offsets = [0, 0], sizes = [2, 32], strides = [1, 1]} : vector<2x96xf32> to vector<2x32xf32>
    %256 = vector.extract_strided_slice %254 {offsets = [0, 32], sizes = [2, 32], strides = [1, 1]} : vector<2x96xf32> to vector<2x32xf32>
    %257 = vector.extract_strided_slice %254 {offsets = [0, 64], sizes = [2, 32], strides = [1, 1]} : vector<2x96xf32> to vector<2x32xf32>
    %258 = vector.extract_strided_slice %248 {offsets = [0, 96], sizes = [2, 32], strides = [1, 1]} : vector<2x128xf32> to vector<2x32xf32>
    %259 = math.tanh %258 : vector<2x32xf32>
    %260 = arith.mulf %256, %220 : vector<2x32xf32>
    %261 = arith.mulf %255, %259 : vector<2x32xf32>
    %262 = arith.addf %260, %261 : vector<2x32xf32>
    %263 = math.tanh %262 : vector<2x32xf32>
    %264 = arith.mulf %257, %263 : vector<2x32xf32>
    %c5 = arith.constant 5 : index
    %c0_55 = arith.constant 0 : index
    %c0_56 = arith.constant 0 : index
    %265 = vector.load %arg7[%c5, %c0_55, %c0_56] : memref<8x2x32xf32, #tpu.memory_space<vmem>>, vector<1x2x32xf32>
    %266 = vector.shape_cast %265 : vector<1x2x32xf32> to vector<2x32xf32>
    %267 = vector.shape_cast %264 : vector<2x32xf32> to vector<1x2x32xf32>
    tpu.vector_store %arg7[%c5, %c0_55, %c0_56], %267 {strides = array<i32>} : memref<8x2x32xf32, #tpu.memory_space<vmem>>, vector<1x2x32xf32>,
    %268 = vector.extract_strided_slice %8 {offsets = [12, 0], sizes = [2, 128], strides = [1, 1]} : vector<16x128xf32> to vector<2x128xf32>
    %cst_57 = arith.constant dense<0.000000e+00> : vector<2x128xf32>
    %269 = tpu.matmul %244, %9, %cst_57 {dimension_numbers = #tpu.dot_dimension_numbers<[1], [0], [0], [1], [0, 0, 1, 1], [], []>} : vector<2x32xf32>, vector<32x128xf32>, vector<2x128xf32> -> vector<2x128xf32>
    %270 = arith.addf %268, %269 : vector<2x128xf32>
    %271 = vector.extract_strided_slice %270 {offsets = [0, 0], sizes = [2, 96], strides = [1, 1]} : vector<2x128xf32> to vector<2x96xf32>
    %272 = arith.negf %271 : vector<2x96xf32>
    %273 = math.exp %272 : vector<2x96xf32>
    %cst_58 = arith.constant 1.000000e+00 : f32
    %274 = vector.broadcast %cst_58 : f32 to vector<2x96xf32>
    %275 = arith.addf %274, %273 : vector<2x96xf32>
    %276 = arith.divf %274, %275 : vector<2x96xf32>
    %277 = vector.extract_strided_slice %276 {offsets = [0, 0], sizes = [2, 32], strides = [1, 1]} : vector<2x96xf32> to vector<2x32xf32>
    %278 = vector.extract_strided_slice %276 {offsets = [0, 32], sizes = [2, 32], strides = [1, 1]} : vector<2x96xf32> to vector<2x32xf32>
    %279 = vector.extract_strided_slice %276 {offsets = [0, 64], sizes = [2, 32], strides = [1, 1]} : vector<2x96xf32> to vector<2x32xf32>
    %280 = vector.extract_strided_slice %270 {offsets = [0, 96], sizes = [2, 32], strides = [1, 1]} : vector<2x128xf32> to vector<2x32xf32>
    %281 = math.tanh %280 : vector<2x32xf32>
    %282 = arith.mulf %278, %242 : vector<2x32xf32>
    %283 = arith.mulf %277, %281 : vector<2x32xf32>
    %284 = arith.addf %282, %283 : vector<2x32xf32>
    %285 = math.tanh %284 : vector<2x32xf32>
    %286 = arith.mulf %279, %285 : vector<2x32xf32>
    %287 = tpu.concatenate %286, %264 in 1 : vector<2x32xf32>, vector<2x32xf32> -> vector<2x64xf32>
    %cst_59 = arith.constant dense<0.000000e+00> : vector<2x128xf32>
    %288 = tpu.matmul %287, %10, %cst_59 {dimension_numbers = #tpu.dot_dimension_numbers<[1], [0], [0], [1], [0, 0, 1, 1], [], []>} : vector<2x64xf32>, vector<64x128xf32>, vector<2x128xf32> -> vector<2x128xf32>
    %289 = vector.broadcast %11 : vector<1x128xf32> to vector<2x128xf32>
    %290 = arith.addf %288, %289 : vector<2x128xf32>
    %291 = vector.extract_strided_slice %290 {offsets = [0, 0], sizes = [2, 96], strides = [1, 1]} : vector<2x128xf32> to vector<2x96xf32>
    %292 = arith.negf %291 : vector<2x96xf32>
    %293 = math.exp %292 : vector<2x96xf32>
    %cst_60 = arith.constant 1.000000e+00 : f32
    %294 = vector.broadcast %cst_60 : f32 to vector<2x96xf32>
    %295 = arith.addf %294, %293 : vector<2x96xf32>
    %296 = arith.divf %294, %295 : vector<2x96xf32>
    %297 = vector.extract_strided_slice %296 {offsets = [0, 0], sizes = [2, 32], strides = [1, 1]} : vector<2x96xf32> to vector<2x32xf32>
    %298 = vector.extract_strided_slice %296 {offsets = [0, 32], sizes = [2, 32], strides = [1, 1]} : vector<2x96xf32> to vector<2x32xf32>
    %299 = vector.extract_strided_slice %296 {offsets = [0, 64], sizes = [2, 32], strides = [1, 1]} : vector<2x96xf32> to vector<2x32xf32>
    %300 = vector.extract_strided_slice %290 {offsets = [0, 96], sizes = [2, 32], strides = [1, 1]} : vector<2x128xf32> to vector<2x32xf32>
    %301 = math.tanh %300 : vector<2x32xf32>
    %302 = arith.mulf %298, %262 : vector<2x32xf32>
    %303 = arith.mulf %297, %301 : vector<2x32xf32>
    %304 = arith.addf %302, %303 : vector<2x32xf32>
    %305 = math.tanh %304 : vector<2x32xf32>
    %306 = arith.mulf %299, %305 : vector<2x32xf32>
    %c6 = arith.constant 6 : index
    %c0_61 = arith.constant 0 : index
    %c0_62 = arith.constant 0 : index
    %307 = vector.load %arg7[%c6, %c0_61, %c0_62] : memref<8x2x32xf32, #tpu.memory_space<vmem>>, vector<1x2x32xf32>
    %308 = vector.shape_cast %307 : vector<1x2x32xf32> to vector<2x32xf32>
    %309 = vector.shape_cast %306 : vector<2x32xf32> to vector<1x2x32xf32>
    tpu.vector_store %arg7[%c6, %c0_61, %c0_62], %309 {strides = array<i32>} : memref<8x2x32xf32, #tpu.memory_space<vmem>>, vector<1x2x32xf32>,
    %310 = vector.extract_strided_slice %8 {offsets = [14, 0], sizes = [2, 128], strides = [1, 1]} : vector<16x128xf32> to vector<2x128xf32>
    %cst_63 = arith.constant dense<0.000000e+00> : vector<2x128xf32>
    %311 = tpu.matmul %286, %9, %cst_63 {dimension_numbers = #tpu.dot_dimension_numbers<[1], [0], [0], [1], [0, 0, 1, 1], [], []>} : vector<2x32xf32>, vector<32x128xf32>, vector<2x128xf32> -> vector<2x128xf32>
    %312 = arith.addf %310, %311 : vector<2x128xf32>
    %313 = vector.extract_strided_slice %312 {offsets = [0, 0], sizes = [2, 96], strides = [1, 1]} : vector<2x128xf32> to vector<2x96xf32>
    %314 = arith.negf %313 : vector<2x96xf32>
    %315 = math.exp %314 : vector<2x96xf32>
    %cst_64 = arith.constant 1.000000e+00 : f32
    %316 = vector.broadcast %cst_64 : f32 to vector<2x96xf32>
    %317 = arith.addf %316, %315 : vector<2x96xf32>
    %318 = arith.divf %316, %317 : vector<2x96xf32>
    %319 = vector.extract_strided_slice %318 {offsets = [0, 0], sizes = [2, 32], strides = [1, 1]} : vector<2x96xf32> to vector<2x32xf32>
    %320 = vector.extract_strided_slice %318 {offsets = [0, 32], sizes = [2, 32], strides = [1, 1]} : vector<2x96xf32> to vector<2x32xf32>
    %321 = vector.extract_strided_slice %318 {offsets = [0, 64], sizes = [2, 32], strides = [1, 1]} : vector<2x96xf32> to vector<2x32xf32>
    %322 = vector.extract_strided_slice %312 {offsets = [0, 96], sizes = [2, 32], strides = [1, 1]} : vector<2x128xf32> to vector<2x32xf32>
    %323 = math.tanh %322 : vector<2x32xf32>
    %324 = arith.mulf %320, %284 : vector<2x32xf32>
    %325 = arith.mulf %319, %323 : vector<2x32xf32>
    %326 = arith.addf %324, %325 : vector<2x32xf32>
    %327 = math.tanh %326 : vector<2x32xf32>
    %328 = arith.mulf %321, %327 : vector<2x32xf32>
    %329 = tpu.concatenate %328, %306 in 1 : vector<2x32xf32>, vector<2x32xf32> -> vector<2x64xf32>
    %cst_65 = arith.constant dense<0.000000e+00> : vector<2x128xf32>
    %330 = tpu.matmul %329, %10, %cst_65 {dimension_numbers = #tpu.dot_dimension_numbers<[1], [0], [0], [1], [0, 0, 1, 1], [], []>} : vector<2x64xf32>, vector<64x128xf32>, vector<2x128xf32> -> vector<2x128xf32>
    %331 = vector.broadcast %11 : vector<1x128xf32> to vector<2x128xf32>
    %332 = arith.addf %330, %331 : vector<2x128xf32>
    %333 = vector.extract_strided_slice %332 {offsets = [0, 0], sizes = [2, 96], strides = [1, 1]} : vector<2x128xf32> to vector<2x96xf32>
    %334 = arith.negf %333 : vector<2x96xf32>
    %335 = math.exp %334 : vector<2x96xf32>
    %cst_66 = arith.constant 1.000000e+00 : f32
    %336 = vector.broadcast %cst_66 : f32 to vector<2x96xf32>
    %337 = arith.addf %336, %335 : vector<2x96xf32>
    %338 = arith.divf %336, %337 : vector<2x96xf32>
    %339 = vector.extract_strided_slice %338 {offsets = [0, 0], sizes = [2, 32], strides = [1, 1]} : vector<2x96xf32> to vector<2x32xf32>
    %340 = vector.extract_strided_slice %338 {offsets = [0, 32], sizes = [2, 32], strides = [1, 1]} : vector<2x96xf32> to vector<2x32xf32>
    %341 = vector.extract_strided_slice %338 {offsets = [0, 64], sizes = [2, 32], strides = [1, 1]} : vector<2x96xf32> to vector<2x32xf32>
    %342 = vector.extract_strided_slice %332 {offsets = [0, 96], sizes = [2, 32], strides = [1, 1]} : vector<2x128xf32> to vector<2x32xf32>
    %343 = math.tanh %342 : vector<2x32xf32>
    %344 = arith.mulf %340, %304 : vector<2x32xf32>
    %345 = arith.mulf %339, %343 : vector<2x32xf32>
    %346 = arith.addf %344, %345 : vector<2x32xf32>
    %347 = math.tanh %346 : vector<2x32xf32>
    %348 = arith.mulf %341, %347 : vector<2x32xf32>
    %c7 = arith.constant 7 : index
    %c0_67 = arith.constant 0 : index
    %c0_68 = arith.constant 0 : index
    %349 = vector.load %arg7[%c7, %c0_67, %c0_68] : memref<8x2x32xf32, #tpu.memory_space<vmem>>, vector<1x2x32xf32>
    %350 = vector.shape_cast %349 : vector<1x2x32xf32> to vector<2x32xf32>
    %351 = vector.shape_cast %348 : vector<2x32xf32> to vector<1x2x32xf32>
    tpu.vector_store %arg7[%c7, %c0_67, %c0_68], %351 {strides = array<i32>} : memref<8x2x32xf32, #tpu.memory_space<vmem>>, vector<1x2x32xf32>,
    %c0_69 = arith.constant 0 : index
    %c0_70 = arith.constant 0 : index
    %352 = vector.load %arg8[%c0_69, %c0_70] : memref<2x32xf32, #tpu.memory_space<vmem>>, vector<2x32xf32>
    tpu.vector_store %arg8[%c0_69, %c0_70], %328 {strides = array<i32>} : memref<2x32xf32, #tpu.memory_space<vmem>>, vector<2x32xf32>,
    %c0_71 = arith.constant 0 : index
    %c0_72 = arith.constant 0 : index
    %353 = vector.load %arg9[%c0_71, %c0_72] : memref<2x32xf32, #tpu.memory_space<vmem>>, vector<2x32xf32>
    tpu.vector_store %arg9[%c0_71, %c0_72], %326 {strides = array<i32>} : memref<2x32xf32, #tpu.memory_space<vmem>>, vector<2x32xf32>,
    %c0_73 = arith.constant 0 : index
    %c0_74 = arith.constant 0 : index
    %354 = vector.load %arg10[%c0_73, %c0_74] : memref<2x32xf32, #tpu.memory_space<vmem>>, vector<2x32xf32>
    tpu.vector_store %arg10[%c0_73, %c0_74], %348 {strides = array<i32>} : memref<2x32xf32, #tpu.memory_space<vmem>>, vector<2x32xf32>,
    %c0_75 = arith.constant 0 : index
    %c0_76 = arith.constant 0 : index
    %355 = vector.load %arg11[%c0_75, %c0_76] : memref<2x32xf32, #tpu.memory_space<vmem>>, vector<2x32xf32>
    tpu.vector_store %arg11[%c0_75, %c0_76], %346 {strides = array<i32>} : memref<2x32xf32, #tpu.memory_space<vmem>>, vector<2x32xf32>,
    return
  }
  func.func @transform_0(%arg0: i32) -> (i32, i32) {
    %c0_i32 = arith.constant 0 : i32
    %c0_i32_0 = arith.constant 0 : i32
    return %arg0, %c0_i32 : i32, i32
  }
  func.func @transform_1(%arg0: i32) -> (i32, i32) {
    %c0_i32 = arith.constant 0 : i32
    %c0_i32_0 = arith.constant 0 : i32
    %c0_i32_1 = arith.constant 0 : i32
    return %c0_i32, %c0_i32_0 : i32, i32
  }
  func.func @transform_2(%arg0: i32) -> (i32, i32) {
    %c0_i32 = arith.constant 0 : i32
    %c0_i32_0 = arith.constant 0 : i32
    %c0_i32_1 = arith.constant 0 : i32
    return %c0_i32, %c0_i32_0 : i32, i32
  }
  func.func @transform_3(%arg0: i32) -> (i32, i32) {
    %c0_i32 = arith.constant 0 : i32
    %c0_i32_0 = arith.constant 0 : i32
    %c0_i32_1 = arith.constant 0 : i32
    return %c0_i32, %c0_i32_0 : i32, i32
  }
  func.func @transform_4(%arg0: i32) -> (i32, i32) {
    %c0_i32 = arith.constant 0 : i32
    %c0_i32_0 = arith.constant 0 : i32
    %c0_i32_1 = arith.constant 0 : i32
    return %c0_i32, %c0_i32_0 : i32, i32
  }
  func.func @transform_5(%arg0: i32) -> (i32, i32) {
    %c0_i32 = arith.constant 0 : i32
    %c0_i32_0 = arith.constant 0 : i32
    %c0_i32_1 = arith.constant 0 : i32
    return %c0_i32, %c0_i32_0 : i32, i32
  }
  func.func @transform_6(%arg0: i32) -> (i32, i32, i32) {
    %c0_i32 = arith.constant 0 : i32
    %c0_i32_0 = arith.constant 0 : i32
    %c0_i32_1 = arith.constant 0 : i32
    return %arg0, %c0_i32, %c0_i32_0 : i32, i32, i32
  }
}

</mosaic_0001>

<bundles_post_ra>
// kernel: mann_forward.1
= control target key start
LH: loop header
LB: loop body
LE: loop exit
PB: predicated region body
PF: predicated region fallthrough
CT: control target
= control target key end

     0   :  { %s3506_s21 = smov 0   ;;  %s4247_s0 = inlined_call_operand.vmem [shape: f32[32,788], index: 0, kind: input, shape index: {}]   ;;  %s4248_s1 = inlined_call_operand.vmem [shape: f32[788,128], index: 1, kind: input, shape index: {}]   ;;  %s4249_s2 = inlined_call_operand.vmem [shape: f32[32,128], index: 2, kind: input, shape index: {}]   ;;  %s4250_s3 = inlined_call_operand.vmem [shape: f32[1,128], index: 3, kind: input, shape index: {}]   ;;  %s4251_s4 = inlined_call_operand.vmem [shape: f32[64,128], index: 4, kind: input, shape index: {}]   ;;  %s4252_s5 = inlined_call_operand.vmem [shape: f32[1,128], index: 5, kind: input, shape index: {}]   ;;  %s4253_s6 = inlined_call_operand.vmem [shape: f32[16,2,32], index: 6, kind: output, shape index: {}]  }
   0x1 LB: > { %s2532_s22 = sadd.s32 4294967295, %s3462_s21   ;;  %p2536_p0 = scmp.ge.s32.totalorder %s3462_s21, 1  ;;  %s3462_s21 = sphi %s3506_s21, %s16_s21  }
   0x2   : > { %p214_p1 = scmp.lt.s32.totalorder %s3462_s21, 3 }
   0x4   : > { %p215_p2 = pnand %p2536_p0, %p214_p1 }
   0x5   : > { %s2537_s23 = sshll.u32 (!%p215_p2), %s2532_s22, 1  ;;  %s2539_s24 = sshll.u32 (!%p215_p2), %s2532_s22, 3 }
   0x6   : > { %218 = sbr.rel (%p215_p2) target bundleno = 6454 (0x1936), region = 44  ;;  %p246_p3 = scmp.lt.s32.totalorder (!%p215_p2), %s2537_s23, 3 }
   0x7   : > { %p253_p4 = scmp.lt.s32.totalorder (!%p215_p2), %s2539_s24, 15  ;;  %p2541_p5 = scmp.ne.s32.totalorder (!%p215_p2), %s2532_s22, 0 }
   0xd   : > { %s4255_s23 = smov (!%p246_p3, %s2537_s23), 3  ;;  %s4257_s24 = smov (!%p253_p4, %s2539_s24), 15 }
   0xe   : > { %s3312_s25 = smul.u32 56, %s4255_s23  ;;  %s2540_s26 = sshll.u32 %s4257_s24, 1  ;;  %vm262_vm0 = vcmask (!%p2541_p5), 254976   ;;  %v3464_v0 = vmov (!%p2541_p5), 0.0  }
   0xf   : > { %s3522_s8 = scalar_lea.vmem %s4253_s6, %s2540_s26  ;;  %261 = sbr.rel (%p2541_p5) target bundleno = 22 (0x16), region = 48  ;;  %263 = vst.msk [vmem:[#allocation2] sm:$0x3] (!%p2541_p5), %vm262_vm0, %v3464_v0  ;;  %264 = vst.msk [vmem:[#allocation3] sm:$0x3] (!%p2541_p5), %vm262_vm0, %v3464_v0 }
  0x10   : > { %s3517_s29 = scalar_lea.vmem %s4247_s0, %s3312_s25  ;;  %265 = vst.msk [vmem:[#allocation4] sm:$0x3] (!%p2541_p5), %vm262_vm0, %v3464_v0  ;;  %266 = vst.msk [vmem:[#allocation5] sm:$0x3] (!%p2541_p5), %vm262_vm0, %v3464_v0 }
  0x16 PF: > { %v297_v1 = vld [vmem:[%s4248_s1 + $0x80] sm:$0xff]  ;;  %v298_v2 = vld [vmem:[%s4248_s1 + $0x88] sm:$0xff]  ;;  %v299_v12 = vld [vmem:[%s4248_s1 + $0x90] sm:$0xff]  ;;  %vm394_vm1 = vcmask 1043456   ;;  %vm387_vm2 = vcmask 162816   ;;  %vm3466_vm3 = vmmov 0  }
  0x17   : > { %v281_v3 = vld [vmem:[%s4248_s1] sm:$0xff]  ;;  %v3068_v4 = vpack.c.bf16 %v298_v2, %v297_v1  ;;  %v282_v5 = vld [vmem:[%s4248_s1 + $0x8] sm:$0xff]  ;;  %v300_v14 = vld [vmem:[%s4248_s1 + $0x98] sm:$0xff]  ;;  %vm715_vm4 = vcmask 261120   ;;  %s3469_s24 = smov 64   ;;  %vm833_vm5 = vcmask 523264  }
  0x18   : > { %v329_v6 = vld [vmem:[%s4248_s1 + $0x180] sm:$0xff]  ;;  %v330_v7 = vld [vmem:[%s4248_s1 + $0x188] sm:$0xff]  ;;  %v3070_v8 = vpack.c.bf16 %v282_v5, %v281_v3  ;;  %v283_v15 = vld [vmem:[%s4248_s1 + $0x10] sm:$0xff]  ;;  %v3072_v17 = vpack.c.bf16 %v300_v14, %v299_v12  ;;  %s3470_s27 = smov 96   ;;  %vm2463_vm6 = vcmask 261126   ;;  %vm939_vm7 = vcmask 254976  }
  0x19   : > { %v3100_v9 = vpack.c.bf16 %v330_v7, %v329_v6  ;;  %v313_v10 = vld [vmem:[%s4248_s1 + $0x100] sm:$0xff]  ;;  %v314_v11 = vld [vmem:[%s4248_s1 + $0x108] sm:$0xff]  ;;  %3069 = vmatprep.subr.bf16.mxu0 %v3068_v4  ;;  %v284_v16 = vld [vmem:[%s4248_s1 + $0x18] sm:$0xff] }
  0x1a   : > { %v3102_v13 = vpack.c.bf16 %v314_v11, %v313_v10  ;;  %3071 = vmatpush3.bf16.msra.mxu0 %v3070_v8  ;;  %v3074_v18 = vpack.c.bf16 %v284_v16, %v283_v15  ;;  %v331_v19 = vld [vmem:[%s4248_s1 + $0x190] sm:$0xff]  ;;  %v332_v20 = vld [vmem:[%s4248_s1 + $0x198] sm:$0xff]  ;;  %v301_v24 = vld [vmem:[%s4248_s1 + $0xa0] sm:$0xff] }
  0x1b   : > { %3101 = vmatprep.subr.bf16.mxu1 %v3100_v9  ;;  %v315_v21 = vld [vmem:[%s4248_s1 + $0x110] sm:$0xff]  ;;  %v3104_v22 = vpack.c.bf16 %v332_v20, %v331_v19  ;;  %v316_v23 = vld [vmem:[%s4248_s1 + $0x118] sm:$0xff]  ;;  %v302_v25 = vld [vmem:[%s4248_s1 + $0xa8] sm:$0xff]  ;;  %3073 = vmatprep.subr.bf16.mxu0 %v3072_v17 }
  0x1c   : > { %3103 = vmatpush3.bf16.msra.mxu1 %v3102_v13  ;;  %v3106_v26 = vpack.c.bf16 %v316_v23, %v315_v21  ;;  %v3076_v27 = vpack.c.bf16 %v302_v25, %v301_v24  ;;  %v285_v28 = vld [vmem:[%s4248_s1 + $0x20] sm:$0xff]  ;;  %v286_v29 = vld [vmem:[%s4248_s1 + $0x28] sm:$0xff]  ;;  %v303_v36 = vld [vmem:[%s4248_s1 + $0xb0] sm:$0xff] }
  0x1d   : > { %v333_v30 = vld [vmem:[%s4248_s1 + $0x1a0] sm:$0xff]  ;;  %3105 = vmatprep.subr.bf16.mxu1 %v3104_v22  ;;  %v334_v31 = vld [vmem:[%s4248_s1 + $0x1a8] sm:$0xff]  ;;  %v3078_v34 = vpack.c.bf16 %v286_v29, %v285_v28  ;;  %v304_v37 = vld [vmem:[%s4248_s1 + $0xb8] sm:$0xff] }
  0x1e   : > { %v317_v32 = vld [vmem:[%s4248_s1 + $0x120] sm:$0xff]  ;;  %v318_v33 = vld [vmem:[%s4248_s1 + $0x128] sm:$0xff]  ;;  %3075 = vmatpush3.bf16.msra.mxu0 %v3074_v18  ;;  %v3108_v35 = vpack.c.bf16 %v334_v31, %v333_v30  ;;  %v287_v38 = vld [vmem:[%s4248_s1 + $0x30] sm:$0xff]  ;;  %v3080_v40 = vpack.c.bf16 %v304_v37, %v303_v36 }
  0x1f   : > { %3077 = vmatprep.subr.bf16.mxu0 %v3076_v27  ;;  %v3110_v39 = vpack.c.bf16 %v318_v33, %v317_v32  ;;  %v288_v41 = vld [vmem:[%s4248_s1 + $0x38] sm:$0xff]  ;;  %v335_v42 = vld [vmem:[%s4248_s1 + $0x1b0] sm:$0xff]  ;;  %v305_v47 = vld [vmem:[%s4248_s1 + $0xc0] sm:$0xff] }
  0x20   : > { %3107 = vmatpush3.bf16.msra.mxu1 %v3106_v26  ;;  %v336_v43 = vld [vmem:[%s4248_s1 + $0x1b8] sm:$0xff]  ;;  %v319_v45 = vld [vmem:[%s4248_s1 + $0x130] sm:$0xff]  ;;  %v306_v48 = vld [vmem:[%s4248_s1 + $0xc8] sm:$0xff]  ;;  %v3082_v49 = vpack.c.bf16 %v288_v41, %v287_v38 }
  0x21   : > { %3109 = vmatprep.subr.bf16.mxu1 %v3108_v35  ;;  %v3112_v44 = vpack.c.bf16 %v336_v43, %v335_v42  ;;  %v320_v46 = vld [vmem:[%s4248_s1 + $0x138] sm:$0xff]  ;;  %v337_v50 = vld [vmem:[%s4248_s1 + $0x1c0] sm:$0xff]  ;;  %v338_v51 = vld [vmem:[%s4248_s1 + $0x1c8] sm:$0xff]  ;;  %v3084_v53 = vpack.c.bf16 %v306_v48, %v305_v47 }
  0x22   : > { %3079 = vmatpush3.bf16.msra.mxu0 %v3078_v34  ;;  %v3114_v52 = vpack.c.bf16 %v320_v46, %v319_v45  ;;  %v289_v54 = vld [vmem:[%s4248_s1 + $0x40] sm:$0xff]  ;;  %v290_v55 = vld [vmem:[%s4248_s1 + $0x48] sm:$0xff]  ;;  %v3116_v57 = vpack.c.bf16 %v338_v51, %v337_v50  ;;  %v307_v59 = vld [vmem:[%s4248_s1 + $0xd0] sm:$0xff] }
  0x23   : > { %3081 = vmatprep.subr.bf16.mxu0 %v3080_v40  ;;  %v321_v56 = vld [vmem:[%s4248_s1 + $0x140] sm:$0xff]  ;;  %v322_v58 = vld [vmem:[%s4248_s1 + $0x148] sm:$0xff]  ;;  %v308_v60 = vld [vmem:[%s4248_s1 + $0xd8] sm:$0xff]  ;;  %v3086_v63 = vpack.c.bf16 %v290_v55, %v289_v54 }
  0x24   : > { %3111 = vmatpush3.bf16.msra.mxu1 %v3110_v39  ;;  %v339_v61 = vld [vmem:[%s4248_s1 + $0x1d0] sm:$0xff]  ;;  %v340_v62 = vld [vmem:[%s4248_s1 + $0x1d8] sm:$0xff]  ;;  %v3118_v0 = vpack.c.bf16 %v322_v58, %v321_v56  ;;  %v3088_v1 = vpack.c.bf16 %v308_v60, %v307_v59  ;;  %v309_v7 = vld [vmem:[%s4248_s1 + $0xe0] sm:$0xff] }
  0x25   : > { %3113 = vmatprep.subr.bf16.mxu1 %v3112_v44  ;;  %v291_v2 = vld [vmem:[%s4248_s1 + $0x50] sm:$0xff]  ;;  %v292_v3 = vld [vmem:[%s4248_s1 + $0x58] sm:$0xff]  ;;  %v3120_v5 = vpack.c.bf16 %v340_v62, %v339_v61  ;;  %v310_v8 = vld [vmem:[%s4248_s1 + $0xe8] sm:$0xff] }
  0x26   : > { %3083 = vmatpush3.bf16.msra.mxu0 %v3082_v49  ;;  %v323_v4 = vld [vmem:[%s4248_s1 + $0x150] sm:$0xff]  ;;  %v324_v6 = vld [vmem:[%s4248_s1 + $0x158] sm:$0xff]  ;;  %v341_v9 = vld [vmem:[%s4248_s1 + $0x1e0] sm:$0xff]  ;;  %v3090_v11 = vpack.c.bf16 %v292_v3, %v291_v2  ;;  %v3092_v15 = vpack.c.bf16 %v310_v8, %v309_v7 }
  0x27   : > { %3085 = vmatprep.subr.bf16.mxu0 %v3084_v53  ;;  %v342_v10 = vld [vmem:[%s4248_s1 + $0x1e8] sm:$0xff]  ;;  %v293_v12 = vld [vmem:[%s4248_s1 + $0x60] sm:$0xff]  ;;  %v3122_v14 = vpack.c.bf16 %v324_v6, %v323_v4  ;;  %v311_v20 = vld [vmem:[%s4248_s1 + $0xf0] sm:$0xff] }
  0x28   : > { %3115 = vmatpush3.bf16.msra.mxu1 %v3114_v52  ;;  %v268_v13 = vld [vmem:[%s3517_s29 + $0x8] sm:$0xff]  ;;  %v325_v17 = vld [vmem:[%s4248_s1 + $0x160] sm:$0xff]  ;;  %v3124_v19 = vpack.c.bf16 %v342_v10, %v341_v9  ;;  %v312_v21 = vld [vmem:[%s4248_s1 + $0xf8] sm:$0xff] }
  0x29   : > { %3117 = vmatprep.subr.bf16.mxu1 %v3116_v57  ;;  %v294_v16 = vld [vmem:[%s4248_s1 + $0x68] sm:$0xff]  ;;  %462 = vmatprep.mubr.f32.mxu0 %v268_v13  ;;  %v270_v22 = vld [vmem:[%s3517_s29 + $0x18] sm:$0xff]  ;;  %v343_v23 = vld [vmem:[%s4248_s1 + $0x1f0] sm:$0xff]  ;;  %v3096_v27 = vpack.c.bf16 %v312_v21, %v311_v20 }
  0x2a   : > { %3087 = vmatpush3.bf16.msra.mxu0 %v3086_v63  ;;  %v326_v18 = vld [vmem:[%s4248_s1 + $0x168] sm:$0xff]  ;;  %v344_v24 = vld [vmem:[%s4248_s1 + $0x1f8] sm:$0xff]  ;;  %537 = vmatprep.mubr.f32.mxu1 %v270_v22  ;;  %v3094_v25 = vpack.c.bf16 %v294_v16, %v293_v12  ;;  %v295_v28 = vld [vmem:[%s4248_s1 + $0x70] sm:$0xff]  ;;  %v3467_v22 = vmov 0.0  }
  0x2b   : > { %3089 = vmatprep.subr.bf16.mxu0 %v3088_v1  ;;  %v3126_v26 = vpack.c.bf16 %v326_v18, %v325_v17  ;;  %v296_v29 = vld [vmem:[%s4248_s1 + $0x78] sm:$0xff]  ;;  %v327_v30 = vld [vmem:[%s4248_s1 + $0x170] sm:$0xff]  ;;  %v3128_v31 = vpack.c.bf16 %v344_v24, %v343_v23  ;;  %v361_v33 = vld [vmem:[%s4248_s1 + $0x280] sm:$0xff] }
  0x2c   : > { %3119 = vmatpush3.bf16.msra.mxu1 %v3118_v0  ;;  %v328_v32 = vld [vmem:[%s4248_s1 + $0x178] sm:$0xff]  ;;  %v362_v34 = vld [vmem:[%s4248_s1 + $0x288] sm:$0xff]  ;;  %v3098_v35 = vpack.c.bf16 %v296_v29, %v295_v28  ;;  %v345_v38 = vld [vmem:[%s4248_s1 + $0x200] sm:$0xff] }
  0x2d   : > { %3121 = vmatprep.subr.bf16.mxu1 %v3120_v5  ;;  %v3130_v36 = vpack.c.bf16 %v328_v32, %v327_v30  ;;  %v3132_v37 = vpack.c.bf16 %v362_v34, %v361_v33  ;;  %v346_v39 = vld [vmem:[%s4248_s1 + $0x208] sm:$0xff]  ;;  %v363_v40 = vld [vmem:[%s4248_s1 + $0x290] sm:$0xff]  ;;  %v364_v41 = vld [vmem:[%s4248_s1 + $0x298] sm:$0xff] }
  0x2e   : > { %3091 = vmatpush3.bf16.msra.mxu0 %v3090_v11  ;;  %v377_v42 = vld [vmem:[%s4248_s1 + $0x300] sm:$0xff]  ;;  %v378_v43 = vld [vmem:[%s4248_s1 + $0x308] sm:$0xff]  ;;  %v3134_v45 = vpack.c.bf16 %v346_v39, %v345_v38  ;;  %v269_v47 = vld [vmem:[%s3517_s29 + $0x10] sm:$0xff]  ;;  %v3136_v48 = vpack.c.bf16 %v364_v41, %v363_v40 }
  0x2f   : > { %3093 = vmatprep.subr.bf16.mxu0 %v3092_v15  ;;  %v267_v44 = vld [vmem:[%s3517_s29] sm:$0xff]  ;;  %v3164_v46 = vpack.c.bf16 %v378_v43, %v377_v42  ;;  %v347_v49 = vld [vmem:[%s4248_s1 + $0x210] sm:$0xff]  ;;  %v348_v50 = vld [vmem:[%s4248_s1 + $0x218] sm:$0xff] }
  0x30   : > { %3123 = vmatpush3.bf16.msra.mxu1 %v3122_v14  ;;  %v365_v51 = vld [vmem:[%s4248_s1 + $0x2a0] sm:$0xff]  ;;  %v366_v52 = vld [vmem:[%s4248_s1 + $0x2a8] sm:$0xff]  ;;  %v277_v55 = vld [vmem:[%s3517_s29 + $0x50] sm:$0xff]  ;;  %v3138_v56 = vpack.c.bf16 %v348_v50, %v347_v49  ;;  %v3465_v14 = vmov 0.0|0.0  }
  0x31   : > { %3125 = vmatprep.subr.bf16.mxu1 %v3124_v19  ;;  %v275_v53 = vld [vmem:[%s3517_s29 + $0x40] sm:$0xff]  ;;  %v350_v57 = vld [vmem:[%s4248_s1 + $0x228] sm:$0xff]  ;;  %v274_v58 = vld [vmem:[%s3517_s29 + $0x38] sm:$0xff]  ;;  %v3140_v60 = vpack.c.bf16 %v366_v52, %v365_v51 }
  0x32   : > { %3095 = vmatpush3.bf16.msra.mxu0 %v3094_v25  ;;  %v349_v54 = vld [vmem:[%s4248_s1 + $0x220] sm:$0xff]  ;;  %v379_v59 = vld [vmem:[%s4248_s1 + $0x310] sm:$0xf]  ;;  %v368_v62 = vld [vmem:[%s4248_s1 + $0x2b8] sm:$0xff] }
  0x33   : > { %3097 = vmatprep.subr.bf16.mxu0 %v3096_v27  ;;  %v367_v61 = vld [vmem:[%s4248_s1 + $0x2b0] sm:$0xff]  ;;  %v276_v63 = vld [vmem:[%s3517_s29 + $0x48] sm:$0xff]  ;;  %v698_v1 = vld [vmem:[%s4249_s2] sm:$0xff]  ;;  %v3142_v4 = vpack.c.bf16 %v350_v57, %v349_v54 }
  0x34   : > { %3127 = vmatpush3.bf16.msra.mxu1 %v3126_v26  ;;  %v273_v0 = vld [vmem:[%s3517_s29 + $0x30] sm:$0xff]  ;;  %v699_v2 = vld [vmem:[%s4249_s2 + $0x8] sm:$0xff]  ;;  %v3144_v6 = vpack.c.bf16 %v368_v62, %v367_v61  ;;  %v352_v7 = vld [vmem:[%s4248_s1 + $0x238] sm:$0xff] }
  0x35   : > { %3129 = vmatprep.subr.bf16.mxu1 %v3128_v31  ;;  %v272_v3 = vld [vmem:[%s3517_s29 + $0x28] sm:$0xff]  ;;  %v351_v5 = vld [vmem:[%s4248_s1 + $0x230] sm:$0xff]  ;;  %v369_v8 = vld [vmem:[%s4248_s1 + $0x2c0] sm:$0xff]  ;;  %v3795_v10 = vpack.c.bf16 %v699_v2, %v698_v1 }
  0x36   : > { %3099 = vmatpush3.bf16.msra.mxu0 %v3098_v35  ;;  %v280_v9 = vld [vmem:[%s3517_s29 + $0x68] sm:$0xff]  ;;  %v700_v12 = vld [vmem:[%s4249_s2 + $0x10] sm:$0xff]  ;;  %v701_v13 = vld [vmem:[%s4249_s2 + $0x18] sm:$0xff]  ;;  %v3146_v15 = vpack.c.bf16 %v352_v7, %v351_v5 }
  0x37   : > { %3133 = vmatprep.subr.bf16.mxu0 %v3132_v37  ;;  %v370_v11 = vld [vmem:[%s4248_s1 + $0x2c8] sm:$0xff]  ;;  %v353_v17 = vld [vmem:[%s4248_s1 + $0x240] sm:$0xff]  ;;  %v3816_v19 = vpack.c.bf16 %v701_v13, %v700_v12  ;;  %v371_v20 = vld [vmem:[%s4248_s1 + $0x2d0] sm:$0xff] }
  0x38   : > { %3131 = vmatpush3.bf16.msra.mxu1 %v3130_v36  ;;  %v3148_v16 = vpack.c.bf16 %v370_v11, %v369_v8  ;;  %v354_v18 = vld [vmem:[%s4248_s1 + $0x248] sm:$0xff]  ;;  %v372_v21 = vld [vmem:[%s4248_s1 + $0x2d8] sm:$0xff]  ;;  %v355_v25 = vld [vmem:[%s4248_s1 + $0x250] sm:$0xff] }
  0x39   : > { %3165 = vmatprep.subr.bf16.mxu1 %v3164_v46  ;;  %463 = vmatmul.mubr.f32.vlgmr.msra.gmra.mrb[0].mxu0 %v267_v44  ;;  %v3150_v23 = vpack.c.bf16 %v354_v18, %v353_v17  ;;  %v3152_v24 = vpack.c.bf16 %v372_v21, %v371_v20  ;;  %v356_v26 = vld [vmem:[%s4248_s1 + $0x258] sm:$0xff]  ;;  %v711_v27 = vld [vmem:[#allocation2] sm:$0x3]  ;;  %v374_v29 = vld [vmem:[%s4248_s1 + $0x2e8] sm:$0xff] }
  0x3a   : > { %3135 = vmatpush3.bf16.msra.mxu0 %v3134_v45  ;;  %467 = vmatprep.mubr.f32.mxu0 %v275_v53  ;;  %v373_v28 = vld [vmem:[%s4248_s1 + $0x2e0] sm:$0xff]  ;;  %v3154_v30 = vpack.c.bf16 %v356_v26, %v355_v25  ;;  %v358_v33 = vld [vmem:[%s4248_s1 + $0x268] sm:$0xff]  ;;  %v375_v34 = vld [vmem:[%s4248_s1 + $0x2f0] sm:$0xff] }
  0x3b   : > { %538 = vmatmul.mubr.f32.vlgmr.msra.gmra.mrb[0].mxu1 %v269_v47  ;;  %3137 = vmatprep.subr.bf16.mxu0 %v3136_v48  ;;  %v3156_v31 = vpack.c.bf16 %v374_v29, %v373_v28  ;;  %v357_v32 = vld [vmem:[%s4248_s1 + $0x260] sm:$0xff]  ;;  %v376_v35 = vld [vmem:[%s4248_s1 + $0x2f8] sm:$0xff]  ;;  %v359_v38 = vld [vmem:[%s4248_s1 + $0x270] sm:$0xff] }
  0x3c   : > { %3167 = vmatpush3.bf16.msra.mxu1 %v3164_v46  ;;  %542 = vmatprep.mubr.f32.mxu1 %v277_v55  ;;  %v3158_v36 = vpack.c.bf16 %v358_v33, %v357_v32  ;;  %v3160_v37 = vpack.c.bf16 %v376_v35, %v375_v34  ;;  %v360_v39 = vld [vmem:[%s4248_s1 + $0x278] sm:$0xff]  ;;  %v271_v41 = vld [vmem:[%s3517_s29 + $0x20] sm:$0xff]  ;;  %v703_v29 = vld [vmem:[%s4251_s4 + $0x8] sm:$0xff] }
  0x3d   : > { %468 = vmatmul.mubr.f32.gmra.mrb[2].mxu0 %v274_v58  ;;  %2823 = vmatprep.subr.msk.mxu1 %vm394_vm1, %v379_v59  ;;  %v3162_v40 = vpack.c.bf16 %v360_v39, %v359_v38  ;;  %v279_v42 = vld [vmem:[%s3517_s29 + $0x60] sm:$0xff]  ;;  %v278_v43 = vld [vmem:[%s3517_s29 + $0x58] sm:$0xff]  ;;  %s3468_s29 = smov 32   ;;  %v707_v35 = vld [vmem:[%s4251_s4 + $0x28] sm:$0xff] }
  0x3e   : > { %3139 = vmatpush3.bf16.msra.mxu0 %v3138_v56  ;;  %612 = vmatprep.mubr.f32.mxu0 %v272_v3  ;;  %v2542_v45 = vld [vmem:[%s4250_s3] ss:$0 sm:$0xff]  ;;  %v705_v32 = vld [vmem:[%s4251_s4 + $0x18] sm:$0xff] }
  0x3f   : > { %543 = vmatmul.mubr.f32.gmra.mrb[2].mxu1 %v276_v63  ;;  %3141 = vmatprep.subr.bf16.mxu0 %v3140_v60  ;;  %v702_v28 = vld [vmem:[%s4251_s4] sm:$0xff]  ;;  %v709_v38 = vld [vmem:[%s4251_s4 + $0x38] sm:$0xff] }
  0x40   : > { %2825 = vmatprep.mubr.msk.f32.mxu1 %vm387_vm2, %v273_v0  ;;  %2824 = vmatpush3.msk.msra.mxu1 %vm394_vm1, %v379_v59  ;;  %v706_v34 = vld [vmem:[%s4251_s4 + $0x20] sm:$0xff] }
  0x41   : > { %3168 = vmatprep.subr.bf16.mxu1 %v3465_v14 }
  0x42   : > { %3143 = vmatpush3.bf16.msra.mxu0 %v3142_v4 }
  0x43   : > { %2826 = vmatmul.mubr.msk.f32.vlgmr.msra.gmra.mrb[4].mxu1 %vm387_vm2, %v280_v9  ;;  %3145 = vmatprep.subr.bf16.mxu0 %v3144_v6 }
  0x44   : > { %3170 = vmatpush3.bf16.msra.mxu1 %v3795_v10  ;;  %2836 = vmatprep.mubr.msk.f32.mxu1 %vm3466_vm3, %v3467_v22 }
  0x45   : > { %3171 = vmatprep.subr.bf16.mxu1 %v3465_v14 }
  0x46   : > { %3147 = vmatpush3.bf16.msra.mxu0 %v3146_v15  ;;  %v712_v15 = vld [vmem:[#allocation3] sm:$0x3] }
  0x47   : > { %3149 = vmatprep.subr.bf16.mxu0 %v3148_v16 }
  0x48   : > { %3173 = vmatpush3.bf16.msra.mxu1 %v3816_v19 }
  0x49   : > { %3174 = vmatprep.subr.bf16.mxu1 %v3465_v14 }
  0x4a   : > { %3151 = vmatpush3.bf16.msra.mxu0 %v3150_v23 }
  0x4b   : > { %2837 = vmatmul.mubr.msk.f32.vlgmr.msra.gmra.mrb[6].mxu1 %vm715_vm4, %v711_v27  ;;  %3153 = vmatprep.subr.bf16.mxu0 %v3152_v24 }
  0x4c   : > { %2855 = vmatprep.mubr.msk.f32.mxu1 %vm3466_vm3, %v3467_v22 }
  0x4e   : > { %3155 = vmatpush3.bf16.msra.mxu0 %v3154_v30  ;;  %v704_v30 = vld [vmem:[%s4251_s4 + $0x10] sm:$0xff] }
  0x4f   : > { %3157 = vmatprep.subr.bf16.mxu0 %v3156_v31  ;;  %v3895_v31 = vpack.c.bf16 %v703_v29, %v702_v28  ;;  %v3901_v33 = vpack.c.bf16 %v705_v32, %v704_v30 }
  0x51   : > { %3176 = vmatpush3.bf16.msra.mxu1 %v3895_v31 }
  0x52   : > { %3159 = vmatpush3.bf16.msra.mxu0 %v3158_v36  ;;  %3177 = vmatprep.subr.bf16.mxu1 %v3465_v14  ;;  %v3911_v36 = vpack.c.bf16 %v707_v35, %v706_v34 }
  0x53   : > { %3161 = vmatprep.subr.bf16.mxu0 %v3160_v37  ;;  %v708_v37 = vld [vmem:[%s4251_s4 + $0x30] sm:$0xff] }
  0x55   : > { %3179 = vmatpush3.bf16.msra.mxu1 %v3901_v33 }
  0x56   : > { %3163 = vmatpush3.bf16.msra.mxu0 %v3162_v40  ;;  %3180 = vmatprep.subr.bf16.mxu1 %v3465_v14  ;;  %v3922_v40 = vpack.c.bf16 %v709_v38, %v708_v37 }
  0x57   : > { %3186 = vmatprep.subr.bf16.mxu0 %v3465_v14 }
  0x59   : > { %613 = vmatmul.mubr.f32.vlgmr.msra.gmra.mrb[4].mxu0 %v271_v41  ;;  %3182 = vmatpush3.bf16.msra.mxu1 %v3911_v36  ;;  %v713_v41 = vld [vmem:[#allocation4] sm:$0x3] }
  0x5a   : > { %617 = vmatprep.mubr.f32.mxu0 %v279_v42  ;;  %3188 = vmatpush3.bf16.msra.mxu0 %v3795_v10 }
  0x5b   : > { %3189 = vmatprep.subr.bf16.mxu0 %v3465_v14  ;;  %3183 = vmatprep.subr.bf16.mxu1 %v3465_v14 }
  0x5d   : > { %618 = vmatmul.mubr.f32.gmra.mrb[6].mxu0 %v278_v43  ;;  %3185 = vmatpush3.bf16.msra.mxu1 %v3922_v40 }
  0x5e   : > { %3191 = vmatpush3.bf16.msra.mxu0 %v3816_v19  ;;  %2866 = vmatprep.mubr.msk.f32.mxu0 %vm3466_vm3, %v3467_v22 }
  0x5f   : > { %3204 = vmatprep.subr.bf16.mxu0 %v3465_v14  ;;  %3192 = vmatprep.subr.bf16.mxu1 %v3465_v14 }
 0x10c   : > { %v2620_v44 = vpop.f32.mrb[0].mxu0 }
 0x10d   : > { %v2621_v46 = vpop.f32.mrb[1].mxu0 }
 0x10e   : > { %v2658_v47 = vpop.f32.mrb[0].mxu1  ;;  %v2622_v48 = vadd.f32 %v2621_v46, %v2620_v44 }
 0x10f   : > { %v2659_v49 = vpop.f32.mrb[1].mxu1 }
 0x110   : > { %v2660_v50 = vadd.f32 %v2659_v49, %v2658_v47  ;;  %v465_v51 = vadd.f32 %v2622_v48, %v2542_v45  ;;  %v2623_v52 = vpop.f32.mrb[2].mxu0  ;;  %v3951_v47 = vld [vmem:[%s4252_s5] ss:$0 sm:$0xff] }
 0x111   : > { %v2624_v53 = vpop.f32.mrb[3].mxu0 }
 0x112   : > { %v2661_v54 = vpop.f32.mrb[2].mxu1  ;;  %v540_v55 = vadd.f32 %v2660_v50, %v465_v51  ;;  %v2625_v56 = vadd.f32 %v2624_v53, %v2623_v52 }
 0x113   : > { %v2662_v57 = vpop.f32.mrb[3].mxu1 }
 0x114   : > { %v2663_v58 = vadd.f32 %v2662_v57, %v2661_v54  ;;  %v470_v59 = vadd.f32 %v2625_v56, %v2542_v45  ;;  %v714_v57 = vld [vmem:[#allocation5] sm:$0x3] }
 0x116   : > { %v2827_v60 = vpop.f32.mrb[4].mxu1  ;;  %v545_v61 = vadd.f32 %v2663_v58, %v470_v59 }
 0x117   : > { %v689_v62 = vpop.f32.mrb[5].mxu1 }
 0x11e   : > { %v785_v63 = vpop.f32.mrb[6].mxu1 }
 0x11f   : > { %v2838_v0 = vpop.f32.mrb[7].mxu1 }
 0x12c   : > { %v2696_v1 = vpop.f32.mrb[4].mxu0 }
 0x12d   : > { %v2697_v2 = vpop.f32.mrb[5].mxu0 }
 0x12e   : > { %v2698_v3 = vadd.f32 %v2697_v2, %v2696_v1 }
 0x130   : > { %v615_v4 = vadd.f32 %v2698_v3, %v540_v55  ;;  %v2699_v5 = vpop.f32.mrb[6].mxu0 }
 0x131   : > { %v2700_v6 = vpop.f32.mrb[7].mxu0 }
 0x132   : > { %v3875_v7 = vadd.f32 %v689_v62, %v615_v4  ;;  %v2701_v8 = vadd.f32 %v2700_v6, %v2699_v5 }
 0x134   : > { %v620_v9 = vadd.f32 %v2701_v8, %v545_v61  ;;  %v789_v11 = vadd.f32 %v785_v63, %v3875_v7 }
 0x136   : > { %v3878_v12 = vadd.f32 %v2827_v60, %v620_v9  ;;  %3328 = vtanh.f32 %v789_v11  ;;  %v2547_v16 = vmul.f32 -1.442695, %v789_v11 }
 0x138   : > { %3330 = vpow2.f32 %v2547_v16 }
 0x140   : > { %v3329_v13 = vpop.eup %3328 }
 0x141   : > { %803 = vrot.lane.b32.xlu0 %v3329_v13, %s3468_s29 }
 0x142   : > { %v3331_v17 = vpop.eup %3330 }
 0x143   : > { %v793_v18 = vadd.f32 1.0, %v3331_v17 }
 0x145   : > { %798 = vrot.lane.b32.xlu0 %v712_v15, %s3468_s29  ;;  %3332 = vrcp.f32 %v793_v18 }
 0x14f   : > { %v3333_v20 = vpop.eup %3332 }
 0x1b3   : > { %v804_v21 = vpop.permute.xlu0 %803 }
 0x1b4   : > { %v806_v23 = vmul.f32 %v3333_v20, %v804_v21 }
 0x1b6   : > { %808 = vrot.lane.b32.xlu1 %v806_v23, %s3468_s29 }
 0x1b7   : > { %v799_v24 = vpop.permute.xlu0 %798 }
 0x1b8   : > { %v801_v25 = vmul.f32 %v3333_v20, %v799_v24 }
 0x228   : > { %v809_v26 = vpop.permute.xlu1 %808 }
 0x229   : > { %v3883_v27 = vadd.f32 %v809_v26, %v801_v25 }
 0x22b   : > { %3334 = vtanh.f32 %v3883_v27  ;;  %v1025_v8 = vrot.slane %v3883_v27, 6 }
 0x235   : > { %v3335_v39 = vpop.eup %3334 }
 0x236   : > { %814 = vrot.lane.b32.xlu1 %v3335_v39, %s3468_s29 }
 0x23a   : > { %823 = vrot.lane.b32.xlu1 %v713_v41, %s3468_s29 }
 0x2a8   : > { %v815_v42 = vpop.permute.xlu1 %814 }
 0x2a9   : > { %v817_v43 = vmul.f32 %v3333_v20, %v815_v42 }
 0x2ab   : > { %819 = vrot.lane.b32.xlu0 %v817_v43, %s3469_s24 }
 0x2ac   : > { %v824_v44 = vpop.permute.xlu1 %823 }
 0x31d   : > { %v820_v45 = vpop.permute.xlu0 %819 }
 0x31e   : > { %v826_v46 = vsel %vm715_vm4, %v820_v45, %v824_v44  ;;  %2867 = vmatmul.mubr.msk.f32.vlgmr.msra.gmra.mrb[8].mxu0 %vm715_vm4, %v820_v45 }
 0x31f   : > { %2856 = vmatmul.mubr.msk.f32.vlgmr.msra.gmra.mrb[8].mxu1 %vm833_vm5, %v826_v46  ;;  %3206 = vmatpush3.bf16.msra.mxu0 %v3795_v10 }
 0x320   : > { %3194 = vmatpush3.bf16.msra.mxu1 %v3895_v31  ;;  %3207 = vmatprep.subr.bf16.mxu0 %v3465_v14 }
 0x321   : > { %3195 = vmatprep.subr.bf16.mxu1 %v3465_v14  ;;  %2885 = vmatprep.mubr.msk.f32.mxu1 %vm3466_vm3, %v3467_v22 }
 0x322   : > { %2896 = vmatprep.mubr.msk.f32.mxu0 %vm3466_vm3, %v3467_v22 }
 0x323   : > { %3209 = vmatpush3.bf16.msra.mxu0 %v3816_v19 }
 0x324   : > { %3197 = vmatpush3.bf16.msra.mxu1 %v3901_v33  ;;  %3210 = vmatprep.subr.bf16.mxu0 %v3465_v14 }
 0x325   : > { %3198 = vmatprep.subr.bf16.mxu1 %v3465_v14 }
 0x328   : > { %3200 = vmatpush3.bf16.msra.mxu1 %v3911_v36 }
 0x329   : > { %3201 = vmatprep.subr.bf16.mxu1 %v3465_v14 }
 0x32c   : > { %3203 = vmatpush3.bf16.msra.mxu1 %v3922_v40 }
 0x32d   : > { %3222 = vmatprep.subr.bf16.mxu1 %v3465_v14 }
 0x3f1   : > { %v1009_v48 = vpop.f32.mrb[8].mxu0 }
 0x3f2   : > { %v1014_v49 = vrot.slane %v1009_v48, 6  ;;  %v903_v50 = vpop.f32.mrb[8].mxu1  ;;  %v2868_v51 = vpop.f32.mrb[9].mxu0 }
 0x3f3   : > { %v904_v52 = vadd.f32 %v3951_v47, %v903_v50  ;;  %v2857_v53 = vpop.f32.mrb[9].mxu1 }
 0x3f4   : > { %v1016_v54 = vadd.f32 %v1014_v49, %v3875_v7 }
 0x3f5   : > { %3336 = vtanh.f32 %v904_v52  ;;  %v2550_v58 = vmul.f32 -1.442695, %v904_v52 }
 0x3f6   : > { %3338 = vtanh.f32 %v1016_v54  ;;  %v2552_v59 = vmul.f32 -1.442695, %v1016_v54 }
 0x3f7   : > { %3340 = vpow2.f32 %v2550_v58 }
 0x3f8   : > { %3342 = vpow2.f32 %v2552_v59 }
 0x3ff   : > { %v3337_v55 = vpop.eup %3336 }
 0x400   : > { %v3339_v56 = vpop.eup %3338  ;;  %920 = vrot.lane.b32.xlu0 %v3337_v55, %s3468_s29 }
 0x401   : > { %1029 = vrot.lane.b32.xlu1 %v3339_v56, %s3468_s29  ;;  %v3341_v60 = vpop.eup %3340 }
 0x402   : > { %v3343_v61 = vpop.eup %3342  ;;  %v910_v62 = vadd.f32 1.0, %v3341_v60 }
 0x403   : > { %v1020_v63 = vadd.f32 1.0, %v3343_v61 }
 0x404   : > { %915 = vrot.lane.b32.xlu0 %v714_v57, %s3468_s29  ;;  %3344 = vrcp.f32 %v910_v62 }
 0x405   : > { %3346 = vrcp.f32 %v1020_v63 }
 0x40e   : > { %v3345_v0 = vpop.eup %3344 }
 0x40f   : > { %v3347_v2 = vpop.eup %3346 }
 0x410   : > { %v1027_v13 = vmul.f32 %v3347_v2, %v1025_v8 }
 0x472   : > { %v921_v1 = vpop.permute.xlu0 %920 }
 0x473   : > { %v923_v3 = vmul.f32 %v3345_v0, %v921_v1  ;;  %v1030_v4 = vpop.permute.xlu1 %1029 }
 0x474   : > { %v1032_v5 = vmul.f32 %v3347_v2, %v1030_v4 }
 0x475   : > { %925 = vrot.lane.b32.xlu1 %v923_v3, %s3468_s29 }
 0x476   : > { %1034 = vrot.lane.b32.xlu0 %v1032_v5, %s3468_s29  ;;  %v916_v6 = vpop.permute.xlu0 %915 }
 0x477   : > { %v918_v9 = vmul.f32 %v3345_v0, %v916_v6 }
 0x4e7   : > { %v926_v11 = vpop.permute.xlu1 %925 }
 0x4e8   : > { %v3961_v15 = vadd.f32 %v926_v11, %v918_v9  ;;  %v1035_v16 = vpop.permute.xlu0 %1034 }
 0x4e9   : > { %v3963_v17 = vadd.f32 %v1035_v16, %v1027_v13 }
 0x4ea   : > { %3348 = vtanh.f32 %v3961_v15 }
 0x4eb   : > { %3350 = vtanh.f32 %v3963_v17  ;;  %v1244_v60 = vrot.slane %v3963_v17, 6 }
 0x4f4   : > { %v3349_v18 = vpop.eup %3348 }
 0x4f5   : > { %v3351_v20 = vpop.eup %3350  ;;  %931 = vrot.lane.b32.xlu1 %v3349_v18, %s3468_s29 }
 0x4f6   : > { %1040 = vrot.lane.b32.xlu0 %v3351_v20, %s3468_s29 }
 0x567   : > { %v932_v21 = vpop.permute.xlu1 %931 }
 0x568   : > { %v3969_v23 = vmul.f32 %v3345_v0, %v932_v21  ;;  %v1041_v24 = vpop.permute.xlu0 %1040 }
 0x569   : > { %v1043_v25 = vmul.f32 %v3347_v2, %v1041_v24 }
 0x56a   : > { %v1048_v26 = vrot.slane %v3969_v23, 6 }
 0x56b   : > { %1045 = vrot.lane.b32.xlu1 %v1043_v25, %s3469_s24  ;;  %v1157_v27 = vrot.slane %v1043_v25, 2 }
 0x56c   : > { %1049 = vrot.lane.b32.xlu0 %v1048_v26, %s3470_s27 }
 0x56f   : > { %1158 = vrot.lane.b32.xlu1 %v1157_v27, %s3469_s24 }
 0x5dd   : > { %v1046_v28 = vpop.permute.xlu1 %1045 }
 0x5de   : > { %v1050_v29 = vpop.permute.xlu0 %1049 }
 0x5df   : > { %v1052_v30 = vsel %vm715_vm4, %v1046_v28, %v1050_v29 }
 0x5e0   : > { %v1054_v32 = vrot.slane %v1052_v30, 2 }
 0x5e1   : > { %v1159_v34 = vpop.permute.xlu1 %1158 }
 0x5e2   : > { %2886 = vmatmul.mubr.msk.f32.vlgmr.msra.gmra.mrb[10].mxu1 %vm833_vm5, %v1054_v32  ;;  %2897 = vmatmul.mubr.msk.f32.vlgmr.msra.gmra.mrb[10].mxu0 %vm715_vm4, %v1159_v34 }
 0x5e3   : > { %3212 = vmatpush3.bf16.msra.mxu0 %v3895_v31  ;;  %3224 = vmatpush3.bf16.msra.mxu1 %v3795_v10 }
 0x5e4   : > { %3213 = vmatprep.subr.bf16.mxu0 %v3465_v14  ;;  %3225 = vmatprep.subr.bf16.mxu1 %v3465_v14 }
 0x5e5   : > { %2915 = vmatprep.mubr.msk.f32.mxu0 %vm3466_vm3, %v3467_v22  ;;  %2926 = vmatprep.mubr.msk.f32.mxu1 %vm3466_vm3, %v3467_v22 }
 0x5e7   : > { %3215 = vmatpush3.bf16.msra.mxu0 %v3901_v33  ;;  %3227 = vmatpush3.bf16.msra.mxu1 %v3816_v19 }
 0x5e8   : > { %3216 = vmatprep.subr.bf16.mxu0 %v3465_v14  ;;  %3228 = vmatprep.subr.bf16.mxu1 %v3465_v14 }
 0x5eb   : > { %3218 = vmatpush3.bf16.msra.mxu0 %v3911_v36 }
 0x5ec   : > { %3219 = vmatprep.subr.bf16.mxu0 %v3465_v14 }
 0x5ef   : > { %3221 = vmatpush3.bf16.msra.mxu0 %v3922_v40 }
 0x5f0   : > { %3240 = vmatprep.subr.bf16.mxu0 %v3465_v14 }
 0x6b5   : > { %v1123_v35 = vpop.f32.mrb[10].mxu1  ;;  %v1228_v37 = vpop.f32.mrb[10].mxu0 }
 0x6b6   : > { %v1124_v38 = vadd.f32 %v3951_v47, %v1123_v35  ;;  %v1233_v39 = vrot.slane %v1228_v37, 4  ;;  %v2887_v41 = vpop.f32.mrb[11].mxu1  ;;  %v2898_v42 = vpop.f32.mrb[11].mxu0 }
 0x6b8   : > { %3352 = vtanh.f32 %v1124_v38  ;;  %v1235_v43 = vadd.f32 %v1233_v39, %v3875_v7  ;;  %v2554_v46 = vmul.f32 -1.442695, %v1124_v38 }
 0x6ba   : > { %3354 = vtanh.f32 %v1235_v43  ;;  %v2557_v48 = vmul.f32 -1.442695, %v1235_v43 }
 0x6bb   : > { %3356 = vpow2.f32 %v2554_v46 }
 0x6bc   : > { %3358 = vpow2.f32 %v2557_v48 }
 0x6c2   : > { %v3353_v44 = vpop.eup %3352 }
 0x6c3   : > { %1136 = vrot.lane.b32.xlu0 %v3353_v44, %s3468_s29 }
 0x6c4   : > { %v3355_v45 = vpop.eup %3354 }
 0x6c5   : > { %1248 = vrot.lane.b32.xlu1 %v3355_v45, %s3468_s29  ;;  %v3357_v49 = vpop.eup %3356 }
 0x6c6   : > { %v3359_v50 = vpop.eup %3358  ;;  %v1130_v51 = vadd.f32 1.0, %v3357_v49 }
 0x6c7   : > { %v1239_v52 = vadd.f32 1.0, %v3359_v50 }
 0x6c8   : > { %3360 = vrcp.f32 %v1130_v51 }
 0x6c9   : > { %3362 = vrcp.f32 %v1239_v52 }
 0x6d2   : > { %v3361_v53 = vpop.eup %3360 }
 0x6d3   : > { %v3363_v56 = vpop.eup %3362  ;;  %v1134_v59 = vmul.f32 %v3361_v53, %v3961_v15 }
 0x6d4   : > { %v1246_v63 = vmul.f32 %v3363_v56, %v1244_v60 }
 0x735   : > { %v1137_v54 = vpop.permute.xlu0 %1136 }
 0x736   : > { %v1139_v55 = vmul.f32 %v3361_v53, %v1137_v54 }
 0x737   : > { %v1249_v57 = vpop.permute.xlu1 %1248 }
 0x738   : > { %1141 = vrot.lane.b32.xlu0 %v1139_v55, %s3468_s29  ;;  %v1251_v58 = vmul.f32 %v3363_v56, %v1249_v57 }
 0x73a   : > { %1253 = vrot.lane.b32.xlu1 %v1251_v58, %s3468_s29 }
 0x7aa   : > { %v1142_v61 = vpop.permute.xlu0 %1141 }
 0x7ab   : > { %v4002_v62 = vadd.f32 %v1142_v61, %v1134_v59 }
 0x7ac   : > { %v1254_v0 = vpop.permute.xlu1 %1253 }
 0x7ad   : > { %3364 = vtanh.f32 %v4002_v62  ;;  %v4005_v1 = vadd.f32 %v1254_v0, %v1246_v63 }
 0x7af   : > { %3366 = vtanh.f32 %v4005_v1  ;;  %v1463_v48 = vrot.slane %v4005_v1, 6 }
 0x7b7   : > { %v3365_v2 = vpop.eup %3364 }
 0x7b8   : > { %1147 = vrot.lane.b32.xlu0 %v3365_v2, %s3468_s29 }
 0x7b9   : > { %v3367_v3 = vpop.eup %3366 }
 0x7ba   : > { %1259 = vrot.lane.b32.xlu1 %v3367_v3, %s3468_s29 }
 0x82a   : > { %v1148_v4 = vpop.permute.xlu0 %1147 }
 0x82b   : > { %v4010_v5 = vmul.f32 %v3361_v53, %v1148_v4 }
 0x82c   : > { %v1260_v8 = vpop.permute.xlu1 %1259 }
 0x82d   : > { %v1267_v6 = vrot.slane %v4010_v5, 4  ;;  %v1262_v9 = vmul.f32 %v3363_v56, %v1260_v8 }
 0x82f   : > { %1268 = vrot.lane.b32.xlu1 %v1267_v6, %s3470_s27  ;;  %1264 = vrot.lane.b32.xlu0 %v1262_v9, %s3469_s24  ;;  %v1376_v11 = vrot.slane %v1262_v9, 4 }
 0x833   : > { %1377 = vrot.lane.b32.xlu0 %v1376_v11, %s3469_s24 }
 0x8a1   : > { %v1269_v13 = vpop.permute.xlu1 %1268  ;;  %v1265_v15 = vpop.permute.xlu0 %1264 }
 0x8a2   : > { %v1271_v16 = vsel %vm715_vm4, %v1265_v15, %v1269_v13 }
 0x8a3   : > { %v1273_v17 = vrot.slane %v1271_v16, 4 }
 0x8a5   : > { %v1378_v18 = vpop.permute.xlu0 %1377  ;;  %2916 = vmatmul.mubr.msk.f32.vlgmr.msra.gmra.mrb[12].mxu0 %vm833_vm5, %v1273_v17 }
 0x8a6   : > { %2927 = vmatmul.mubr.msk.f32.vlgmr.msra.gmra.mrb[12].mxu1 %vm715_vm4, %v1378_v18  ;;  %3242 = vmatpush3.bf16.msra.mxu0 %v3795_v10 }
 0x8a7   : > { %3230 = vmatpush3.bf16.msra.mxu1 %v3895_v31  ;;  %3243 = vmatprep.subr.bf16.mxu0 %v3465_v14 }
 0x8a8   : > { %3231 = vmatprep.subr.bf16.mxu1 %v3465_v14  ;;  %2945 = vmatprep.mubr.msk.f32.mxu1 %vm3466_vm3, %v3467_v22 }
 0x8a9   : > { %2956 = vmatprep.mubr.msk.f32.mxu0 %vm3466_vm3, %v3467_v22 }
 0x8aa   : > { %3245 = vmatpush3.bf16.msra.mxu0 %v3816_v19 }
 0x8ab   : > { %3233 = vmatpush3.bf16.msra.mxu1 %v3901_v33  ;;  %3246 = vmatprep.subr.bf16.mxu0 %v3465_v14 }
 0x8ac   : > { %3234 = vmatprep.subr.bf16.mxu1 %v3465_v14 }
 0x8af   : > { %3236 = vmatpush3.bf16.msra.mxu1 %v3911_v36 }
 0x8b0   : > { %3237 = vmatprep.subr.bf16.mxu1 %v3465_v14 }
 0x8b3   : > { %3239 = vmatpush3.bf16.msra.mxu1 %v3922_v40 }
 0x8b4   : > { %3258 = vmatprep.subr.bf16.mxu1 %v3465_v14 }
 0x978   : > { %v1342_v20 = vpop.f32.mrb[12].mxu0 }
 0x979   : > { %v1343_v21 = vadd.f32 %v3951_v47, %v1342_v20  ;;  %v2917_v24 = vpop.f32.mrb[13].mxu0  ;;  %v1447_v25 = vpop.f32.mrb[12].mxu1 }
 0x97a   : > { %v1452_v26 = vrot.slane %v1447_v25, 2  ;;  %v2928_v27 = vpop.f32.mrb[13].mxu1 }
 0x97b   : > { %3368 = vtanh.f32 %v1343_v21  ;;  %v2559_v32 = vmul.f32 -1.442695, %v1343_v21 }
 0x97c   : > { %v1454_v28 = vadd.f32 %v1452_v26, %v3875_v7 }
 0x97e   : > { %3370 = vtanh.f32 %v1454_v28  ;;  %v2562_v34 = vmul.f32 -1.442695, %v1454_v28 }
 0x97f   : > { %3372 = vpow2.f32 %v2559_v32 }
 0x980   : > { %3374 = vpow2.f32 %v2562_v34 }
 0x985   : > { %v3369_v29 = vpop.eup %3368 }
 0x986   : > { %1355 = vrot.lane.b32.xlu1 %v3369_v29, %s3468_s29 }
 0x988   : > { %v3371_v30 = vpop.eup %3370 }
 0x989   : > { %1467 = vrot.lane.b32.xlu0 %v3371_v30, %s3468_s29  ;;  %v3373_v35 = vpop.eup %3372 }
 0x98a   : > { %v3375_v37 = vpop.eup %3374  ;;  %v1349_v38 = vadd.f32 1.0, %v3373_v35 }
 0x98b   : > { %v1458_v39 = vadd.f32 1.0, %v3375_v37 }
 0x98c   : > { %3376 = vrcp.f32 %v1349_v38 }
 0x98d   : > { %3378 = vrcp.f32 %v1458_v39 }
 0x996   : > { %v3377_v41 = vpop.eup %3376 }
 0x997   : > { %v3379_v43 = vpop.eup %3378  ;;  %v1353_v46 = vmul.f32 %v3377_v41, %v4002_v62 }
 0x998   : > { %v1465_v51 = vmul.f32 %v3379_v43, %v1463_v48 }
 0x9f8   : > { %v1356_v42 = vpop.permute.xlu1 %1355 }
 0x9f9   : > { %v1358_v7 = vmul.f32 %v3377_v41, %v1356_v42 }
 0x9fb   : > { %v1468_v44 = vpop.permute.xlu0 %1467  ;;  %1360 = vrot.lane.b32.xlu1 %v1358_v7, %s3468_s29 }
 0x9fc   : > { %v1470_v45 = vmul.f32 %v3379_v43, %v1468_v44 }
 0x9fe   : > { %1472 = vrot.lane.b32.xlu0 %v1470_v45, %s3468_s29 }
 0xa6d   : > { %v1361_v49 = vpop.permute.xlu1 %1360 }
 0xa6e   : > { %v4043_v50 = vadd.f32 %v1361_v49, %v1353_v46 }
 0xa70   : > { %3380 = vtanh.f32 %v4043_v50  ;;  %v1473_v52 = vpop.permute.xlu0 %1472 }
 0xa71   : > { %v4046_v53 = vadd.f32 %v1473_v52, %v1465_v51 }
 0xa73   : > { %3382 = vtanh.f32 %v4046_v53  ;;  %v1679_v32 = vrot.slane %v4046_v53, 6 }
 0xa7a   : > { %v3381_v54 = vpop.eup %3380 }
 0xa7b   : > { %1366 = vrot.lane.b32.xlu1 %v3381_v54, %s3468_s29 }
 0xa7d   : > { %v3383_v55 = vpop.eup %3382 }
 0xa7e   : > { %1478 = vrot.lane.b32.xlu0 %v3383_v55, %s3468_s29 }
 0xaed   : > { %v1367_v56 = vpop.permute.xlu1 %1366 }
 0xaee   : > { %v4051_v57 = vmul.f32 %v3377_v41, %v1367_v56 }
 0xaf0   : > { %v1486_v58 = vrot.slane %v4051_v57, 2  ;;  %v1479_v59 = vpop.permute.xlu0 %1478 }
 0xaf1   : > { %v1481_v60 = vmul.f32 %v3379_v43, %v1479_v59 }
 0xaf2   : > { %1487 = vrot.lane.b32.xlu0 %v1486_v58, %s3470_s27 }
 0xaf3   : > { %1483 = vrot.lane.b32.xlu1 %v1481_v60, %s3469_s24  ;;  %v1595_v61 = vrot.slane %v1481_v60, 6 }
 0xaf7   : > { %1596 = vrot.lane.b32.xlu1 %v1595_v61, %s3469_s24 }
 0xb64   : > { %v1488_v62 = vpop.permute.xlu0 %1487 }
 0xb65   : > { %v1484_v63 = vpop.permute.xlu1 %1483 }
 0xb66   : > { %v1490_v0 = vsel %vm715_vm4, %v1484_v63, %v1488_v62 }
 0xb67   : > { %v1492_v1 = vrot.slane %v1490_v0, 6 }
 0xb69   : > { %2946 = vmatmul.mubr.msk.f32.vlgmr.msra.gmra.mrb[14].mxu1 %vm833_vm5, %v1492_v1  ;;  %v1597_v2 = vpop.permute.xlu1 %1596 }
 0xb6a   : > { %2957 = vmatmul.mubr.msk.f32.vlgmr.msra.gmra.mrb[14].mxu0 %vm715_vm4, %v1597_v2  ;;  %3260 = vmatpush3.bf16.msra.mxu1 %v3795_v10 }
 0xb6b   : > { %3248 = vmatpush3.bf16.msra.mxu0 %v3895_v31  ;;  %3261 = vmatprep.subr.bf16.mxu1 %v3465_v14 }
 0xb6c   : > { %3249 = vmatprep.subr.bf16.mxu0 %v3465_v14  ;;  %2986 = vmatprep.mubr.msk.f32.mxu1 %vm3466_vm3, %v3467_v22 }
 0xb6d   : > { %2975 = vmatprep.mubr.msk.f32.mxu0 %vm3466_vm3, %v3467_v22 }
 0xb6e   : > { %3263 = vmatpush3.bf16.msra.mxu1 %v3816_v19 }
 0xb6f   : > { %3251 = vmatpush3.bf16.msra.mxu0 %v3901_v33  ;;  %3264 = vmatprep.subr.bf16.mxu1 %v3465_v14 }
 0xb70   : > { %3252 = vmatprep.subr.bf16.mxu0 %v3465_v14 }
 0xb73   : > { %3254 = vmatpush3.bf16.msra.mxu0 %v3911_v36 }
 0xb74   : > { %3255 = vmatprep.subr.bf16.mxu0 %v3465_v14 }
 0xb77   : > { %3257 = vmatpush3.bf16.msra.mxu0 %v3922_v40 }
 0xb78   : > { %3276 = vmatprep.subr.bf16.mxu0 %v3465_v14 }
 0xc3c   : > { %v1561_v3 = vpop.f32.mrb[14].mxu1 }
 0xc3d   : > { %v1562_v4 = vadd.f32 %v3951_v47, %v1561_v3  ;;  %v2947_v6 = vpop.f32.mrb[15].mxu1  ;;  %v1666_v8 = vpop.f32.mrb[14].mxu0 }
 0xc3e   : > { %v1670_v9 = vadd.f32 %v1666_v8, %v3878_v12  ;;  %v2958_v11 = vpop.f32.mrb[15].mxu0 }
 0xc3f   : > { %3384 = vtanh.f32 %v1562_v4  ;;  %v2564_v16 = vmul.f32 -1.442695, %v1562_v4 }
 0xc40   : > { %3386 = vtanh.f32 %v1670_v9  ;;  %v2567_v17 = vmul.f32 -1.442695, %v1670_v9 }
 0xc41   : > { %3388 = vpow2.f32 %v2564_v16 }
 0xc42   : > { %3390 = vpow2.f32 %v2567_v17 }
 0xc49   : > { %v3385_v13 = vpop.eup %3384 }
 0xc4a   : > { %v3387_v15 = vpop.eup %3386  ;;  %1574 = vrot.lane.b32.xlu0 %v3385_v13, %s3468_s29 }
 0xc4b   : > { %1683 = vrot.lane.b32.xlu1 %v3387_v15, %s3468_s29  ;;  %v3389_v18 = vpop.eup %3388 }
 0xc4c   : > { %v3391_v20 = vpop.eup %3390  ;;  %v1568_v21 = vadd.f32 1.0, %v3389_v18 }
 0xc4d   : > { %v1674_v24 = vadd.f32 1.0, %v3391_v20 }
 0xc4e   : > { %3392 = vrcp.f32 %v1568_v21 }
 0xc4f   : > { %3394 = vrcp.f32 %v1674_v24 }
 0xc58   : > { %v3393_v25 = vpop.eup %3392 }
 0xc59   : > { %v3395_v27 = vpop.eup %3394  ;;  %v1572_v34 = vmul.f32 %v3393_v25, %v4043_v50 }
 0xc5a   : > { %v1681_v37 = vmul.f32 %v3395_v27, %v1679_v32 }
 0xcbc   : > { %v1575_v26 = vpop.permute.xlu0 %1574 }
 0xcbd   : > { %v1577_v28 = vmul.f32 %v3393_v25, %v1575_v26  ;;  %v1684_v29 = vpop.permute.xlu1 %1683 }
 0xcbe   : > { %v1686_v30 = vmul.f32 %v3395_v27, %v1684_v29 }
 0xcbf   : > { %1579 = vrot.lane.b32.xlu0 %v1577_v28, %s3468_s29 }
 0xcc0   : > { %1688 = vrot.lane.b32.xlu1 %v1686_v30, %s3468_s29 }
 0xd31   : > { %v1580_v35 = vpop.permute.xlu0 %1579 }
 0xd32   : > { %v4084_v38 = vadd.f32 %v1580_v35, %v1572_v34  ;;  %v1689_v39 = vpop.permute.xlu1 %1688 }
 0xd33   : > { %v4086_v41 = vadd.f32 %v1689_v39, %v1681_v37 }
 0xd34   : > { %3396 = vtanh.f32 %v4084_v38 }
 0xd35   : > { %3398 = vtanh.f32 %v4086_v41  ;;  %v1893_v13 = vrot.slane %v4086_v41, 6 }
 0xd3e   : > { %v3397_v42 = vpop.eup %3396 }
 0xd3f   : > { %v3399_v7 = vpop.eup %3398  ;;  %1585 = vrot.lane.b32.xlu0 %v3397_v42, %s3468_s29 }
 0xd40   : > { %1694 = vrot.lane.b32.xlu1 %v3399_v7, %s3468_s29 }
 0xdb1   : > { %v1586_v43 = vpop.permute.xlu0 %1585 }
 0xdb2   : > { %v4092_v44 = vmul.f32 %v3393_v25, %v1586_v43  ;;  %v1695_v45 = vpop.permute.xlu1 %1694 }
 0xdb3   : > { %v1697_v46 = vmul.f32 %v3395_v27, %v1695_v45 }
 0xdb4   : > { %1702 = vrot.lane.b32.xlu1 %v4092_v44, %s3470_s27 }
 0xdb5   : > { %1699 = vrot.lane.b32.xlu0 %v1697_v46, %s3469_s24 }
 0xe26   : > { %v1703_v48 = vpop.permute.xlu1 %1702 }
 0xe27   : > { %v1700_v49 = vpop.permute.xlu0 %1699 }
 0xe28   : > { %v1705_v50 = vsel %vm715_vm4, %v1700_v49, %v1703_v48  ;;  %2987 = vmatmul.mubr.msk.f32.vlgmr.msra.gmra.mrb[16].mxu1 %vm715_vm4, %v1700_v49 }
 0xe29   : > { %2976 = vmatmul.mubr.msk.f32.vlgmr.msra.gmra.mrb[16].mxu0 %vm833_vm5, %v1705_v50  ;;  %3266 = vmatpush3.bf16.msra.mxu1 %v3895_v31 }
 0xe2a   : > { %3267 = vmatprep.subr.bf16.mxu1 %v3465_v14  ;;  %3278 = vmatpush3.bf16.msra.mxu0 %v3795_v10 }
 0xe2b   : > { %3279 = vmatprep.subr.bf16.mxu0 %v3465_v14  ;;  %3005 = vmatprep.mubr.msk.f32.mxu1 %vm3466_vm3, %v3467_v22 }
 0xe2c   : > { %3016 = vmatprep.mubr.msk.f32.mxu0 %vm3466_vm3, %v3467_v22 }
 0xe2d   : > { %3269 = vmatpush3.bf16.msra.mxu1 %v3901_v33 }
 0xe2e   : > { %3270 = vmatprep.subr.bf16.mxu1 %v3465_v14  ;;  %3281 = vmatpush3.bf16.msra.mxu0 %v3816_v19 }
 0xe2f   : > { %3282 = vmatprep.subr.bf16.mxu0 %v3465_v14 }
 0xe31   : > { %3272 = vmatpush3.bf16.msra.mxu1 %v3911_v36 }
 0xe32   : > { %3273 = vmatprep.subr.bf16.mxu1 %v3465_v14 }
 0xe35   : > { %3275 = vmatpush3.bf16.msra.mxu1 %v3922_v40 }
 0xe36   : > { %3294 = vmatprep.subr.bf16.mxu1 %v3465_v14 }
 0xefb   : > { %v1877_v51 = vpop.f32.mrb[16].mxu1 }
 0xefc   : > { %v1882_v52 = vrot.slane %v1877_v51, 6  ;;  %v1775_v53 = vpop.f32.mrb[16].mxu0  ;;  %v2988_v54 = vpop.f32.mrb[17].mxu1 }
 0xefd   : > { %v1776_v55 = vadd.f32 %v3951_v47, %v1775_v53  ;;  %v2977_v56 = vpop.f32.mrb[17].mxu0 }
 0xefe   : > { %v1884_v58 = vadd.f32 %v1882_v52, %v3878_v12 }
 0xeff   : > { %3400 = vtanh.f32 %v1776_v55  ;;  %v2569_v61 = vmul.f32 -1.442695, %v1776_v55 }
 0xf00   : > { %3402 = vtanh.f32 %v1884_v58  ;;  %v2572_v62 = vmul.f32 -1.442695, %v1884_v58 }
 0xf01   : > { %3404 = vpow2.f32 %v2569_v61 }
 0xf02   : > { %3406 = vpow2.f32 %v2572_v62 }
 0xf09   : > { %v3401_v59 = vpop.eup %3400 }
 0xf0a   : > { %v3403_v60 = vpop.eup %3402  ;;  %1788 = vrot.lane.b32.xlu0 %v3401_v59, %s3468_s29 }
 0xf0b   : > { %1897 = vrot.lane.b32.xlu1 %v3403_v60, %s3468_s29  ;;  %v3405_v63 = vpop.eup %3404 }
 0xf0c   : > { %v3407_v0 = vpop.eup %3406  ;;  %v1782_v1 = vadd.f32 1.0, %v3405_v63 }
 0xf0d   : > { %v1888_v2 = vadd.f32 1.0, %v3407_v0 }
 0xf0e   : > { %3408 = vrcp.f32 %v1782_v1 }
 0xf0f   : > { %3410 = vrcp.f32 %v1888_v2 }
 0xf18   : > { %v3409_v3 = vpop.eup %3408 }
 0xf19   : > { %v3411_v6 = vpop.eup %3410  ;;  %v1786_v15 = vmul.f32 %v3409_v3, %v4084_v38 }
 0xf1a   : > { %v1895_v17 = vmul.f32 %v3411_v6, %v1893_v13 }
 0xf7c   : > { %v1789_v4 = vpop.permute.xlu0 %1788 }
 0xf7d   : > { %v1791_v8 = vmul.f32 %v3409_v3, %v1789_v4  ;;  %v1898_v9 = vpop.permute.xlu1 %1897 }
 0xf7e   : > { %v1900_v11 = vmul.f32 %v3411_v6, %v1898_v9 }
 0xf7f   : > { %1793 = vrot.lane.b32.xlu0 %v1791_v8, %s3468_s29 }
 0xf80   : > { %1902 = vrot.lane.b32.xlu1 %v1900_v11, %s3468_s29 }
 0xff1   : > { %v1794_v16 = vpop.permute.xlu0 %1793 }
 0xff2   : > { %v4124_v18 = vadd.f32 %v1794_v16, %v1786_v15  ;;  %v1903_v20 = vpop.permute.xlu1 %1902 }
 0xff3   : > { %v4126_v21 = vadd.f32 %v1903_v20, %v1895_v17 }
 0xff4   : > { %3412 = vtanh.f32 %v4124_v18 }
 0xff5   : > { %3414 = vtanh.f32 %v4126_v21  ;;  %v2112_v63 = vrot.slane %v4126_v21, 6 }
 0xffe   : > { %v3413_v24 = vpop.eup %3412 }
 0xfff   : > { %v3415_v25 = vpop.eup %3414  ;;  %1799 = vrot.lane.b32.xlu0 %v3413_v24, %s3468_s29 }
0x1000   : > { %1908 = vrot.lane.b32.xlu1 %v3415_v25, %s3468_s29 }
0x1071   : > { %v1800_v26 = vpop.permute.xlu0 %1799 }
0x1072   : > { %v4132_v27 = vmul.f32 %v3409_v3, %v1800_v26  ;;  %v1909_v28 = vpop.permute.xlu1 %1908 }
0x1073   : > { %v1911_v29 = vmul.f32 %v3411_v6, %v1909_v28 }
0x1074   : > { %v1916_v30 = vrot.slane %v4132_v27, 6 }
0x1075   : > { %1913 = vrot.lane.b32.xlu0 %v1911_v29, %s3469_s24  ;;  %v2025_v32 = vrot.slane %v1911_v29, 2 }
0x1076   : > { %1917 = vrot.lane.b32.xlu1 %v1916_v30, %s3470_s27 }
0x1079   : > { %2026 = vrot.lane.b32.xlu0 %v2025_v32, %s3469_s24 }
0x10e7   : > { %v1914_v34 = vpop.permute.xlu0 %1913 }
0x10e8   : > { %v1918_v35 = vpop.permute.xlu1 %1917 }
0x10e9   : > { %v1920_v37 = vsel %vm715_vm4, %v1914_v34, %v1918_v35 }
0x10ea   : > { %v1922_v38 = vrot.slane %v1920_v37, 2 }
0x10eb   : > { %v2027_v39 = vpop.permute.xlu0 %2026 }
0x10ec   : > { %3006 = vmatmul.mubr.msk.f32.vlgmr.msra.gmra.mrb[18].mxu1 %vm833_vm5, %v1922_v38  ;;  %3017 = vmatmul.mubr.msk.f32.vlgmr.msra.gmra.mrb[18].mxu0 %vm715_vm4, %v2027_v39 }
0x10ed   : > { %3284 = vmatpush3.bf16.msra.mxu0 %v3895_v31  ;;  %3296 = vmatpush3.bf16.msra.mxu1 %v3795_v10 }
0x10ee   : > { %3285 = vmatprep.subr.bf16.mxu0 %v3465_v14  ;;  %3297 = vmatprep.subr.bf16.mxu1 %v3465_v14 }
0x10ef   : > { %3035 = vmatprep.mubr.msk.f32.mxu0 %vm3466_vm3, %v3467_v22  ;;  %3046 = vmatprep.mubr.msk.f32.mxu1 %vm3466_vm3, %v3467_v22 }
0x10f1   : > { %3287 = vmatpush3.bf16.msra.mxu0 %v3901_v33  ;;  %3299 = vmatpush3.bf16.msra.mxu1 %v3816_v19 }
0x10f2   : > { %3288 = vmatprep.subr.bf16.mxu0 %v3465_v14  ;;  %3300 = vmatprep.subr.bf16.mxu1 %v3465_v14 }
0x10f5   : > { %3290 = vmatpush3.bf16.msra.mxu0 %v3911_v36 }
0x10f6   : > { %3291 = vmatprep.subr.bf16.mxu0 %v3465_v14 }
0x10f9   : > { %3293 = vmatpush3.bf16.msra.mxu0 %v3922_v40 }
0x11bf   : > { %v1991_v10 = vpop.f32.mrb[18].mxu1  ;;  %v2096_v41 = vpop.f32.mrb[18].mxu0 }
0x11c0   : > { %v1992_v42 = vadd.f32 %v3951_v47, %v1991_v10  ;;  %v2101_v7 = vrot.slane %v2096_v41, 4  ;;  %v3007_v43 = vpop.f32.mrb[19].mxu1  ;;  %v3018_v45 = vpop.f32.mrb[19].mxu0 }
0x11c2   : > { %3416 = vtanh.f32 %v1992_v42  ;;  %v2103_v19 = vadd.f32 %v2101_v7, %v3878_v12  ;;  %v2574_v49 = vmul.f32 -1.442695, %v1992_v42 }
0x11c4   : > { %3418 = vtanh.f32 %v2103_v19  ;;  %v2577_v50 = vmul.f32 -1.442695, %v2103_v19 }
0x11c5   : > { %3420 = vpow2.f32 %v2574_v49 }
0x11c6   : > { %3422 = vpow2.f32 %v2577_v50 }
0x11cc   : > { %v3417_v46 = vpop.eup %3416 }
0x11cd   : > { %2004 = vrot.lane.b32.xlu1 %v3417_v46, %s3468_s29 }
0x11ce   : > { %v3419_v48 = vpop.eup %3418 }
0x11cf   : > { %2116 = vrot.lane.b32.xlu0 %v3419_v48, %s3468_s29  ;;  %v3421_v51 = vpop.eup %3420 }
0x11d0   : > { %v3423_v52 = vpop.eup %3422  ;;  %v1998_v53 = vadd.f32 1.0, %v3421_v51 }
0x11d1   : > { %v2107_v54 = vadd.f32 1.0, %v3423_v52 }
0x11d2   : > { %3424 = vrcp.f32 %v1998_v53 }
0x11d3   : > { %3426 = vrcp.f32 %v2107_v54 }
0x11dc   : > { %v3425_v55 = vpop.eup %3424 }
0x11dd   : > { %v3427_v59 = vpop.eup %3426  ;;  %v2002_v62 = vmul.f32 %v3425_v55, %v4124_v18 }
0x11de   : > { %v2114_v2 = vmul.f32 %v3427_v59, %v2112_v63 }
0x123f   : > { %v2005_v56 = vpop.permute.xlu1 %2004 }
0x1240   : > { %v2007_v58 = vmul.f32 %v3425_v55, %v2005_v56 }
0x1241   : > { %v2117_v60 = vpop.permute.xlu0 %2116 }
0x1242   : > { %2009 = vrot.lane.b32.xlu1 %v2007_v58, %s3468_s29  ;;  %v2119_v61 = vmul.f32 %v3427_v59, %v2117_v60 }
0x1244   : > { %2121 = vrot.lane.b32.xlu0 %v2119_v61, %s3468_s29 }
0x12b4   : > { %v2010_v0 = vpop.permute.xlu1 %2009 }
0x12b5   : > { %v4164_v1 = vadd.f32 %v2010_v0, %v2002_v62 }
0x12b6   : > { %v2122_v3 = vpop.permute.xlu0 %2121 }
0x12b7   : > { %3428 = vtanh.f32 %v4164_v1  ;;  %v4167_v4 = vadd.f32 %v2122_v3, %v2114_v2 }
0x12b9   : > { %3430 = vtanh.f32 %v4167_v4  ;;  %v2331_v45 = vrot.slane %v4167_v4, 6 }
0x12c1   : > { %v3429_v6 = vpop.eup %3428 }
0x12c2   : > { %2015 = vrot.lane.b32.xlu1 %v3429_v6, %s3468_s29 }
0x12c3   : > { %v3431_v8 = vpop.eup %3430 }
0x12c4   : > { %2127 = vrot.lane.b32.xlu0 %v3431_v8, %s3468_s29 }
0x1334   : > { %v2016_v9 = vpop.permute.xlu1 %2015 }
0x1335   : > { %v4172_v11 = vmul.f32 %v3425_v55, %v2016_v9 }
0x1336   : > { %v2128_v15 = vpop.permute.xlu0 %2127 }
0x1337   : > { %v2135_v13 = vrot.slane %v4172_v11, 4  ;;  %v2130_v16 = vmul.f32 %v3427_v59, %v2128_v15 }
0x1339   : > { %2136 = vrot.lane.b32.xlu0 %v2135_v13, %s3470_s27  ;;  %2132 = vrot.lane.b32.xlu1 %v2130_v16, %s3469_s24  ;;  %v2244_v17 = vrot.slane %v2130_v16, 4 }
0x133d   : > { %2245 = vrot.lane.b32.xlu1 %v2244_v17, %s3469_s24 }
0x13ab   : > { %v2137_v18 = vpop.permute.xlu0 %2136  ;;  %v2133_v20 = vpop.permute.xlu1 %2132 }
0x13ac   : > { %v2139_v21 = vsel %vm715_vm4, %v2133_v20, %v2137_v18 }
0x13ad   : > { %v2141_v24 = vrot.slane %v2139_v21, 4 }
0x13af   : > { %v2246_v25 = vpop.permute.xlu1 %2245  ;;  %3036 = vmatmul.mubr.msk.f32.vlgmr.msra.gmra.mrb[20].mxu0 %vm833_vm5, %v2141_v24 }
0x13b0   : > { %3047 = vmatmul.mubr.msk.f32.vlgmr.msra.gmra.mrb[20].mxu1 %vm715_vm4, %v2246_v25 }
0x13b1   : > { %3302 = vmatpush3.bf16.msra.mxu1 %v3895_v31  ;;  %3065 = vmatprep.mubr.msk.f32.mxu1 %vm3466_vm3, %v3467_v22 }
0x13b2   : > { %3303 = vmatprep.subr.bf16.mxu1 %v3465_v14 }
0x13b5   : > { %3305 = vmatpush3.bf16.msra.mxu1 %v3901_v33 }
0x13b6   : > { %3306 = vmatprep.subr.bf16.mxu1 %v3465_v14 }
0x13b9   : > { %3308 = vmatpush3.bf16.msra.mxu1 %v3911_v36 }
0x13ba   : > { %3309 = vmatprep.subr.bf16.mxu1 %v3465_v14 }
0x13bd   : > { %3311 = vmatpush3.bf16.msra.mxu1 %v3922_v40 }
0x1482   : > { %v2210_v26 = vpop.f32.mrb[20].mxu0 }
0x1483   : > { %v2211_v28 = vadd.f32 %v3951_v47, %v2210_v26  ;;  %v3037_v29 = vpop.f32.mrb[21].mxu0  ;;  %v2315_v31 = vpop.f32.mrb[20].mxu1 }
0x1484   : > { %v2320_v30 = vrot.slane %v2315_v31, 2  ;;  %v3048_v32 = vpop.f32.mrb[21].mxu1 }
0x1485   : > { %3432 = vtanh.f32 %v2211_v28  ;;  %v2579_v14 = vmul.f32 -1.442695, %v2211_v28 }
0x1486   : > { %v2322_v22 = vadd.f32 %v2320_v30, %v3878_v12 }
0x1488   : > { %3434 = vtanh.f32 %v2322_v22  ;;  %v2582_v36 = vmul.f32 -1.442695, %v2322_v22 }
0x1489   : > { %3436 = vpow2.f32 %v2579_v14 }
0x148a   : > { %3438 = vpow2.f32 %v2582_v36 }
0x148f   : > { %v3433_v33 = vpop.eup %3432 }
0x1490   : > { %2223 = vrot.lane.b32.xlu0 %v3433_v33, %s3468_s29 }
0x1492   : > { %v3435_v34 = vpop.eup %3434 }
0x1493   : > { %2335 = vrot.lane.b32.xlu1 %v3435_v34, %s3468_s29  ;;  %v3437_v40 = vpop.eup %3436 }
0x1494   : > { %v3439_v35 = vpop.eup %3438  ;;  %v2217_v37 = vadd.f32 1.0, %v3437_v40 }
0x1495   : > { %v2326_v38 = vadd.f32 1.0, %v3439_v35 }
0x1496   : > { %3440 = vrcp.f32 %v2217_v37 }
0x1497   : > { %3442 = vrcp.f32 %v2326_v38 }
0x14a0   : > { %v3441_v39 = vpop.eup %3440 }
0x14a1   : > { %v3443_v41 = vpop.eup %3442  ;;  %v2221_v43 = vmul.f32 %v3441_v39, %v4164_v1 }
0x14a2   : > { %v2333_v48 = vmul.f32 %v3443_v41, %v2331_v45 }
0x1502   : > { %v2224_v10 = vpop.permute.xlu0 %2223 }
0x1503   : > { %v2226_v12 = vmul.f32 %v3441_v39, %v2224_v10 }
0x1505   : > { %v2336_v42 = vpop.permute.xlu1 %2335  ;;  %2228 = vrot.lane.b32.xlu0 %v2226_v12, %s3468_s29 }
0x1506   : > { %v2338_v7 = vmul.f32 %v3443_v41, %v2336_v42 }
0x1508   : > { %2340 = vrot.lane.b32.xlu1 %v2338_v7, %s3468_s29 }
0x1577   : > { %v2229_v19 = vpop.permute.xlu0 %2228 }
0x1578   : > { %v2231_v46 = vadd.f32 %v2229_v19, %v2221_v43 }
0x157a   : > { %3444 = vtanh.f32 %v2231_v46  ;;  %v2341_v49 = vpop.permute.xlu1 %2340 }
0x157b   : > { %v2343_v50 = vadd.f32 %v2341_v49, %v2333_v48 }
0x157d   : > { %3446 = vtanh.f32 %v2343_v50 }
0x1584   : > { %v3445_v51 = vpop.eup %3444 }
0x1585   : > { %2234 = vrot.lane.b32.xlu0 %v3445_v51, %s3468_s29 }
0x1587   : > { %v3447_v52 = vpop.eup %3446 }
0x1588   : > { %2346 = vrot.lane.b32.xlu1 %v3447_v52, %s3468_s29 }
0x15f7   : > { %v2235_v53 = vpop.permute.xlu0 %2234 }
0x15f8   : > { %v2237_v54 = vmul.f32 %v3441_v39, %v2235_v53 }
0x15fa   : > { %v2354_v55 = vrot.slane %v2237_v54, 2  ;;  %v2347_v56 = vpop.permute.xlu1 %2346 }
0x15fb   : > { %v2349_v58 = vmul.f32 %v3443_v41, %v2347_v56 }
0x15fc   : > { %2355 = vrot.lane.b32.xlu1 %v2354_v55, %s3470_s27 }
0x15fd   : > { %2351 = vrot.lane.b32.xlu0 %v2349_v58, %s3469_s24 }
0x166e   : > { %v2356_v59 = vpop.permute.xlu1 %2355 }
0x166f   : > { %v2352_v60 = vpop.permute.xlu0 %2351 }
0x1670   : > { %v2358_v61 = vsel %vm715_vm4, %v2352_v60, %v2356_v59  ;;  %2464 = vst.msk [vmem:[#allocation2 - $0x6] sm:$0xc0] %vm2463_vm6, %v2352_v60 }
0x1671   : > { %v2360_v62 = vrot.slane %v2358_v61, 6 }
0x1673   : > { %3066 = vmatmul.mubr.msk.f32.vlgmr.msra.gmra.mrb[22].mxu1 %vm833_vm5, %v2360_v62 }
0x1746   : > { %v2429_v63 = vpop.f32.mrb[22].mxu1 }
0x1747   : > { %v2430_v0 = vadd.f32 %v3951_v47, %v2429_v63  ;;  %v3067_v1 = vpop.f32.mrb[23].mxu1 }
0x1749   : > { %3448 = vtanh.f32 %v2430_v0  ;;  %v2584_v3 = vmul.f32 -1.442695, %v2430_v0 }
0x174b   : > { %3450 = vpow2.f32 %v2584_v3 }
0x1753   : > { %v3449_v2 = vpop.eup %3448 }
0x1754   : > { %2442 = vrot.lane.b32.xlu0 %v3449_v2, %s3468_s29 }
0x1755   : > { %v3451_v4 = vpop.eup %3450 }
0x1756   : > { %v2436_v6 = vadd.f32 1.0, %v3451_v4 }
0x1758   : > { %3452 = vrcp.f32 %v2436_v6 }
0x1762   : > { %v3453_v8 = vpop.eup %3452 }
0x1763   : > { %v2440_v47 = vmul.f32 %v3453_v8, %v2231_v46 }
0x17c6   : > { %v2443_v9 = vpop.permute.xlu0 %2442 }
0x17c7   : > { %v2445_v13 = vmul.f32 %v3453_v8, %v2443_v9 }
0x17c9   : > { %2447 = vrot.lane.b32.xlu1 %v2445_v13, %s3468_s29 }
0x17cd   : > { %936 = vrot.lane.b32.xlu1 %v3969_v23, %s3469_s24 }
0x17d1   : > { %1371 = vrot.lane.b32.xlu1 %v4051_v57, %s3469_s24 }
0x17d5   : > { %1804 = vrot.lane.b32.xlu1 %v4132_v27, %s3469_s24 }
0x17d9   : > { %2239 = vrot.lane.b32.xlu1 %v2237_v54, %s3469_s24 }
0x17dd   : > { %2466 = vrot.lane.b32.xlu1 %v2343_v50, %s3470_s27 }
0x183b   : > { %v2448_v15 = vpop.permute.xlu1 %2447 }
0x183c   : > { %v2450_v16 = vadd.f32 %v2448_v15, %v2440_v47 }
0x183e   : > { %3454 = vtanh.f32 %v2450_v16 }
0x183f   : > { %v937_v17 = vpop.permute.xlu1 %936 }
0x1840   : > { %940 = vst.msk [vmem:[%s3522_s8] sm:$0x3] %vm939_vm7, %v937_v17 }
0x1843   : > { %v1372_v23 = vpop.permute.xlu1 %1371 }
0x1844   : > { %2560 = vst.msk [vmem:[%s3522_s8 + $0x4] sm:$0x3] %vm939_vm7, %v1372_v23 }
0x1847   : > { %v1805_v57 = vpop.permute.xlu1 %1804 }
0x1848   : > { %v3455_v18 = vpop.eup %3454  ;;  %2570 = vst.msk [vmem:[%s3522_s8 + $0x8] sm:$0x3] %vm939_vm7, %v1805_v57 }
0x1849   : > { %2453 = vrot.lane.b32.xlu0 %v3455_v18, %s3468_s29 }
0x184b   : > { %v2240_v27 = vpop.permute.xlu1 %2239 }
0x184c   : > { %2580 = vst.msk [vmem:[%s3522_s8 + $0xc] sm:$0x3] %vm939_vm7, %v2240_v27 }
0x184d   : > { %1152 = vrot.lane.b32.xlu0 %v4010_v5, %s3469_s24 }
0x184f   : > { %v2467_v20 = vpop.permute.xlu1 %2466 }
0x1850   : > { %2469 = vst.msk [vmem:[#allocation3 - $0x6] sm:$0xc0] %vm2463_vm6, %v2467_v20 }
0x1851   : > { %1590 = vrot.lane.b32.xlu0 %v4092_v44, %s3469_s24 }
0x1855   : > { %2020 = vrot.lane.b32.xlu0 %v4172_v11, %s3469_s24 }
0x18bb   : > { %v2454_v21 = vpop.permute.xlu0 %2453 }
0x18bc   : > { %v2456_v24 = vmul.f32 %v3453_v8, %v2454_v21 }
0x18be   : > { %2458 = vrot.lane.b32.xlu0 %v2456_v24, %s3469_s24 }
0x18bf   : > { %v1153_v25 = vpop.permute.xlu0 %1152 }
0x18c0   : > { %2555 = vst.msk [vmem:[%s3522_s8 + $0x2] sm:$0x3] %vm939_vm7, %v1153_v25 }
0x18c2   : > { %2472 = vrot.lane.b32.xlu0 %v2450_v16, %s3470_s27 }
0x18c3   : > { %v1591_v5 = vpop.permute.xlu0 %1590 }
0x18c4   : > { %2565 = vst.msk [vmem:[%s3522_s8 + $0x6] sm:$0x3] %vm939_vm7, %v1591_v5 }
0x18c7   : > { %v2021_v26 = vpop.permute.xlu0 %2020 }
0x18c8   : > { %2575 = vst.msk [vmem:[%s3522_s8 + $0xa] sm:$0x3] %vm939_vm7, %v2021_v26 }
0x1930   : > { %v2459_v28 = vpop.permute.xlu0 %2458 }
0x1931   : > { %2585 = vst.msk [vmem:[%s3522_s8 + $0xe] sm:$0x3] %vm939_vm7, %v2459_v28  ;;  %2470 = vst.msk [vmem:[#allocation4] sm:$0x3] %vm939_vm7, %v2459_v28 }
0x1934   : > { %v2473_v44 = vpop.permute.xlu0 %2472 }
0x1935   : > { %2475 = vst.msk [vmem:[#allocation5] sm:$0x3] %vm939_vm7, %v2473_v44 }
0x1936 PF: > { %s16_s21 = sadd.s32 1, %s3462_s21  }
0x1937   : > { %p13_p6 = scmp.ge.s32.totalorder %s16_s21, 4  }
0x1939   :  { %15 = sbr.rel (!%p13_p6) target bundleno = 1 (0x1), region = 85 }

</bundles_post_ra>
